<compile_context>
chip_gen: v6e
topology: v6e:2x2x1
jax: 0.10.0
libtpu: 0.0.40
codegen_flags: <defaults>
</compile_context>

<pallas_src>
import functools

import jax
import jax.numpy as jnp
import numpy as np
from jax import lax
from jax.experimental import pallas as pl
from jax.experimental.pallas import tpu as pltpu


def _round_up(x: int, m: int) -> int:
    return ((x + m - 1) // m) * m


def _bow_kernel(ids_ref, emb_ref, w_ref, b_ref, out_ref, acc_ref, *,
                vs, s_unroll, counts_dtype):
    """Grid = (batch_tiles, vocab_tiles); vocab (axis 1) is the reduction axis
    and MUST stay the innermost grid axis (acc init/finalize depends on it)."""
    k = pl.program_id(1)
    S, Bt = ids_ref.shape          # ids are transposed: [S, Bt]
    Vt, E = emb_ref.shape
    n_chunks = Vt // vs
    base = k * Vt

    @pl.when(k == 0)
    def _init():
        acc_ref[...] = jnp.zeros_like(acc_ref)

    # Partial bag-of-words sum for this vocab tile, accumulated in registers
    # across the vocab sub-chunks, then added to the VMEM accumulator once.
    partial_sum = jnp.zeros((Bt, E), jnp.float32)

    for c in range(n_chunks):      # static, small (Vt / 32)
        # Vocab ids covered by this 32-sublane chunk; batch broadcast on lanes.
        chunk_ids = (jax.lax.broadcasted_iota(jnp.int32, (vs, Bt), 0)
                     + (base + c * vs))

        def body(s, counts):
            tok = ids_ref[pl.ds(s, 1), :]                     # [1, Bt] int32
            return counts + (tok == chunk_ids).astype(counts_dtype)

        # counts[j, b] = #{ s : ids[b, s] == base + c*vs + j } -- the 4-vreg
        # chunk stays register-resident across the whole S loop (no spills).
        counts = lax.fori_loop(0, S, body,
                               jnp.zeros((vs, Bt), counts_dtype),
                               unroll=s_unroll)

        # acc[b, e] += sum_j counts[j, b] * emb[j, e]   (contract vocab dim 0)
        partial_sum = partial_sum + lax.dot_general(
            counts.astype(emb_ref.dtype),
            emb_ref[pl.ds(c * vs, vs), :],
            dimension_numbers=(((0,), (0,)), ((), ())),
            preferred_element_type=jnp.float32)

    acc_ref[...] += partial_sum

    # Classifier only on the last vocab tile: logits = acc @ W + b.
    @pl.when(k == pl.num_programs(1) - 1)
    def _finalize():
        logits = jnp.dot(acc_ref[...], w_ref[...],
                         preferred_element_type=jnp.float32) + b_ref[...]
        out_ref[...] = logits.astype(out_ref.dtype)


def bag_of_words_forward(ids, emb, w, b, *, block_b=128, block_v=256,
                         compute_dtype=jnp.float32):
    """Forward pass of BagOfWordsModel: classify(embed(ids).sum(1)).

    ids: [B, S] int   token ids
    emb: [V, E] f32   embedding table (nn.Embedding.weight)
    w:   [E, C] f32   transpose of PyTorch nn.Linear.weight ([C, E])
    b:   [1, C] f32   nn.Linear.bias
    compute_dtype: f32 (exact, default) or bf16 (v6e/v7x fast path, ~1e-2 rel)
    returns [B, C] f32 logits
    """
    assert block_b % 128 == 0 and block_v % 128 == 0
    B, S = ids.shape
    V, E = emb.shape
    C = w.shape[1]
    compute_dtype = jnp.dtype(compute_dtype)

    # ---- wrapper-level padding to TPU-friendly shapes ----------------------
    E_pad = _round_up(E, 128)                 # lane-dense emb / acc / classifier
    C_pad = _round_up(C, 128)                 # lane-dense output

    # Batch tiling: the transposed ids put batch on the lane axis, so a batch
    # tile must either cover the whole padded batch or be a multiple of 128.
    # B > block_b therefore always gives >= 2 'parallel' tiles (both v7x TCs).
    B8 = _round_up(B, 8)
    Bt = B8 if B8 <= block_b else block_b
    B_pad = _round_up(B, Bt)

    Vt = min(_round_up(V, 128), block_v)      # vocab (reduction) tile
    V_pad = _round_up(V, Vt)

    # Padded ids use -1 (never matches any vocab index -> contributes zero).
    ids_p = jnp.full((B_pad, S), -1, jnp.int32).at[:B, :].set(ids.astype(jnp.int32))
    ids_t = ids_p.T                                            # [S, B_pad]
    emb_p = jnp.zeros((V_pad, E_pad), compute_dtype).at[:V, :E].set(
        emb.astype(compute_dtype))
    w_p = jnp.zeros((E_pad, C_pad), jnp.float32).at[:E, :C].set(
        w.astype(jnp.float32))
    b_p = jnp.zeros((1, C_pad), jnp.float32).at[:, :C].set(
        b.reshape(1, -1).astype(jnp.float32))

    # bf16 counts are exact only for S <= 256; otherwise accumulate in f32 and
    # cast at the dot.
    counts_dtype = (compute_dtype
                    if (compute_dtype == jnp.dtype(jnp.bfloat16) and S <= 256)
                    else jnp.float32)

    grid = (B_pad // Bt, V_pad // Vt)

    kernel = functools.partial(_bow_kernel, vs=32, s_unroll=min(8, S),
                               counts_dtype=counts_dtype)

    emb_bytes = compute_dtype.itemsize
    cost = pl.CostEstimate(
        flops=2 * B_pad * V_pad * E_pad + 2 * B_pad * E_pad * C_pad,
        transcendentals=0,
        bytes_accessed=(grid[0] * V_pad * E_pad * emb_bytes   # table re-streamed per batch tile
                        + B_pad * S * 4                        # ids
                        + (E_pad * C_pad + C_pad) * 4          # classifier weight + bias
                        + B_pad * C_pad * 4),                  # logits
    )

    out = pl.pallas_call(
        kernel,
        out_shape=jax.ShapeDtypeStruct((B_pad, C_pad), jnp.float32),
        grid_spec=pltpu.PrefetchScalarGridSpec(
            num_scalar_prefetch=0,
            grid=grid,
            in_specs=[
                pl.BlockSpec((S, Bt), lambda i, k: (0, i)),        # ids^T (batch on lanes)
                pl.BlockSpec((Vt, E_pad), lambda i, k: (k, 0)),    # streamed emb tile
                pl.BlockSpec((E_pad, C_pad), lambda i, k: (0, 0)),  # classifier weight
                pl.BlockSpec((1, C_pad), lambda i, k: (0, 0)),      # classifier bias
            ],
            out_specs=pl.BlockSpec((Bt, C_pad), lambda i, k: (i, 0)),
            scratch_shapes=[pltpu.VMEM((Bt, E_pad), jnp.float32)],  # running bag sum
        ),
        compiler_params=pltpu.CompilerParams(
            dimension_semantics=("parallel", "arbitrary"),
            vmem_limit_bytes=32 * 1024 * 1024,
        ),
        cost_estimate=cost,
    )(ids_t, emb_p, w_p, b_p)

    return out[:B, :C]


def _reference(ids, emb, w, b):
    return jnp.take(emb, ids, axis=0).sum(axis=1) @ w + b


if __name__ == "__main__":
    key = jax.random.PRNGKey(0)

    # ---- small shapes mirroring the module (single tile everywhere) --------
    B, S, V, E, NC = 4, 8, 64, 32, 5
    k_ids, k_emb, k_w, k_b, key = jax.random.split(key, 5)
    ids = jax.random.randint(k_ids, (B, S), 0, V, dtype=jnp.int32)
    emb = jax.random.normal(k_emb, (V, E), dtype=jnp.float32)
    # nn.Linear(E, 5).weight is [5, E]; we pass its transpose [E, 5].
    w = jax.random.normal(k_w, (E, NC), dtype=jnp.float32) * 0.1
    b = jax.random.normal(k_b, (1, NC), dtype=jnp.float32) * 0.1

    out = jax.block_until_ready(bag_of_words_forward(ids, emb, w, b))
    ref = _reference(ids, emb, w, b)
    np.testing.assert_allclose(np.asarray(out), np.asarray(ref),
                               rtol=1e-5, atol=1e-5)

    # bf16 compute path (the v6e/v7x fast path); counts remain exact, only the
    # embedding-table cast changes numerics.
    out_bf16 = jax.block_until_ready(
        bag_of_words_forward(ids, emb, w, b, compute_dtype=jnp.bfloat16))
    np.testing.assert_allclose(np.asarray(out_bf16), np.asarray(ref),
                               rtol=5e-2, atol=5e-2)

    # ---- moderate shapes exercising batch + vocab tiling and E padding -----
    B2, S2, V2, E2 = 260, 16, 640, 96        # -> 3 batch tiles x 3 vocab tiles
    k_ids, k_emb, k_w, k_b, key = jax.random.split(key, 5)
    ids2 = jax.random.randint(k_ids, (B2, S2), 0, V2, dtype=jnp.int32)
    emb2 = jax.random.normal(k_emb, (V2, E2), dtype=jnp.float32)
    w2 = jax.random.normal(k_w, (E2, NC), dtype=jnp.float32) * 0.1
    b2 = jax.random.normal(k_b, (1, NC), dtype=jnp.float32) * 0.1

    out2 = jax.block_until_ready(bag_of_words_forward(ids2, emb2, w2, b2))
    ref2 = _reference(ids2, emb2, w2, b2)
    np.testing.assert_allclose(np.asarray(out2), np.asarray(ref2),
                               rtol=1e-5, atol=1e-4)

    print("KERNEL_OK")
</pallas_src>

<mosaic_0001>
module attributes {stable_mosaic.version = 11 : i64} {
  func.func @_bow_kernel(%arg0: i32, %arg1: i32, %arg2: memref<8x8xi32, #tpu.memory_space<vmem>>, %arg3: memref<128x128xf32, #tpu.memory_space<vmem>>, %arg4: memref<128x128xf32, #tpu.memory_space<vmem>>, %arg5: memref<1x128xf32, #tpu.memory_space<vmem>>, %arg6: memref<8x128xf32, #tpu.memory_space<vmem>>, %arg7: memref<8x128xf32, #tpu.memory_space<vmem>>) attributes {dimension_semantics = [#tpu.dimension_semantics<parallel>, #tpu.dimension_semantics<arbitrary>], iteration_bounds = array<i64: 1, 1>, scalar_prefetch = 0 : i64, scratch_operands = 1 : i64, tpu.core_type = #tpu.core_type<tc>, window_params = [{transform_indices = @transform_0, window_bounds = array<i64: 8, 8>}, {transform_indices = @transform_1, window_bounds = array<i64: 128, 128>}, {pipeline_mode = #tpu.pipeline_mode<synchronous>, transform_indices = @transform_2, window_bounds = array<i64: 128, 128>}, {pipeline_mode = #tpu.pipeline_mode<synchronous>, transform_indices = @transform_3, window_bounds = array<i64: 1, 128>}, {transform_indices = @transform_4, window_bounds = array<i64: 8, 128>}]} {
    %c128_i32 = arith.constant 128 : i32
    %0 = arith.muli %arg1, %c128_i32 : i32
    %c0_i32 = arith.constant 0 : i32
    %1 = arith.cmpi eq, %arg1, %c0_i32 : i32
    %2 = arith.extui %1 : i1 to i32
    %c0_i32_0 = arith.constant 0 : i32
    %3 = arith.cmpi ne, %2, %c0_i32_0 : i32
    scf.if %3 {
      %cst_80 = arith.constant 0.000000e+00 : f32
      %267 = vector.broadcast %cst_80 : f32 to vector<8x128xf32>
      %c0_81 = arith.constant 0 : index
      %c0_82 = arith.constant 0 : index
      %268 = vector.load %arg7[%c0_81, %c0_82] : memref<8x128xf32, #tpu.memory_space<vmem>>, vector<8x128xf32>
      tpu.vector_store %arg7[%c0_81, %c0_82], %267 {strides = array<i32>} : memref<8x128xf32, #tpu.memory_space<vmem>>, vector<8x128xf32>,
    } else {
    }
    %cst = arith.constant 0.000000e+00 : f32
    %4 = vector.broadcast %cst : f32 to vector<8x128xf32>
    %5 = tpu.iota {dimensions = array<i32: 0>} : vector<32x8xi32>
    %c0_i32_1 = arith.constant 0 : i32
    %6 = arith.addi %0, %c0_i32_1 : i32
    %7 = vector.broadcast %6 : i32 to vector<32x8xi32>
    %8 = arith.addi %5, %7 : vector<32x8xi32>
    %cst_2 = arith.constant 0.000000e+00 : f32
    %9 = vector.broadcast %cst_2 : f32 to vector<32x8xf32>
    %c0_i32_3 = arith.constant 0 : i32
    %10 = arith.index_cast %c0_i32_3 : i32 to index
    %c0 = arith.constant 0 : index
    %11 = vector.load %arg2[%10, %c0] : memref<8x8xi32, #tpu.memory_space<vmem>>, vector<1x8xi32>
    %12 = vector.broadcast %11 : vector<1x8xi32> to vector<32x8xi32>
    %13 = arith.cmpi eq, %12, %8 : vector<32x8xi32>
    %14 = arith.extui %13 : vector<32x8xi1> to vector<32x8xi32>
    %15 = arith.sitofp %14 : vector<32x8xi32> to vector<32x8xf32>
    %16 = arith.addf %9, %15 : vector<32x8xf32>
    %c1_i32 = arith.constant 1 : i32
    %17 = arith.index_cast %c1_i32 : i32 to index
    %c0_4 = arith.constant 0 : index
    %18 = vector.load %arg2[%17, %c0_4] : memref<8x8xi32, #tpu.memory_space<vmem>>, vector<1x8xi32>
    %19 = vector.broadcast %18 : vector<1x8xi32> to vector<32x8xi32>
    %20 = arith.cmpi eq, %19, %8 : vector<32x8xi32>
    %21 = arith.extui %20 : vector<32x8xi1> to vector<32x8xi32>
    %22 = arith.sitofp %21 : vector<32x8xi32> to vector<32x8xf32>
    %23 = arith.addf %16, %22 : vector<32x8xf32>
    %c2_i32 = arith.constant 2 : i32
    %24 = arith.index_cast %c2_i32 : i32 to index
    %c0_5 = arith.constant 0 : index
    %25 = vector.load %arg2[%24, %c0_5] : memref<8x8xi32, #tpu.memory_space<vmem>>, vector<1x8xi32>
    %26 = vector.broadcast %25 : vector<1x8xi32> to vector<32x8xi32>
    %27 = arith.cmpi eq, %26, %8 : vector<32x8xi32>
    %28 = arith.extui %27 : vector<32x8xi1> to vector<32x8xi32>
    %29 = arith.sitofp %28 : vector<32x8xi32> to vector<32x8xf32>
    %30 = arith.addf %23, %29 : vector<32x8xf32>
    %c3_i32 = arith.constant 3 : i32
    %31 = arith.index_cast %c3_i32 : i32 to index
    %c0_6 = arith.constant 0 : index
    %32 = vector.load %arg2[%31, %c0_6] : memref<8x8xi32, #tpu.memory_space<vmem>>, vector<1x8xi32>
    %33 = vector.broadcast %32 : vector<1x8xi32> to vector<32x8xi32>
    %34 = arith.cmpi eq, %33, %8 : vector<32x8xi32>
    %35 = arith.extui %34 : vector<32x8xi1> to vector<32x8xi32>
    %36 = arith.sitofp %35 : vector<32x8xi32> to vector<32x8xf32>
    %37 = arith.addf %30, %36 : vector<32x8xf32>
    %c4_i32 = arith.constant 4 : i32
    %38 = arith.index_cast %c4_i32 : i32 to index
    %c0_7 = arith.constant 0 : index
    %39 = vector.load %arg2[%38, %c0_7] : memref<8x8xi32, #tpu.memory_space<vmem>>, vector<1x8xi32>
    %40 = vector.broadcast %39 : vector<1x8xi32> to vector<32x8xi32>
    %41 = arith.cmpi eq, %40, %8 : vector<32x8xi32>
    %42 = arith.extui %41 : vector<32x8xi1> to vector<32x8xi32>
    %43 = arith.sitofp %42 : vector<32x8xi32> to vector<32x8xf32>
    %44 = arith.addf %37, %43 : vector<32x8xf32>
    %c5_i32 = arith.constant 5 : i32
    %45 = arith.index_cast %c5_i32 : i32 to index
    %c0_8 = arith.constant 0 : index
    %46 = vector.load %arg2[%45, %c0_8] : memref<8x8xi32, #tpu.memory_space<vmem>>, vector<1x8xi32>
    %47 = vector.broadcast %46 : vector<1x8xi32> to vector<32x8xi32>
    %48 = arith.cmpi eq, %47, %8 : vector<32x8xi32>
    %49 = arith.extui %48 : vector<32x8xi1> to vector<32x8xi32>
    %50 = arith.sitofp %49 : vector<32x8xi32> to vector<32x8xf32>
    %51 = arith.addf %44, %50 : vector<32x8xf32>
    %c6_i32 = arith.constant 6 : i32
    %52 = arith.index_cast %c6_i32 : i32 to index
    %c0_9 = arith.constant 0 : index
    %53 = vector.load %arg2[%52, %c0_9] : memref<8x8xi32, #tpu.memory_space<vmem>>, vector<1x8xi32>
    %54 = vector.broadcast %53 : vector<1x8xi32> to vector<32x8xi32>
    %55 = arith.cmpi eq, %54, %8 : vector<32x8xi32>
    %56 = arith.extui %55 : vector<32x8xi1> to vector<32x8xi32>
    %57 = arith.sitofp %56 : vector<32x8xi32> to vector<32x8xf32>
    %58 = arith.addf %51, %57 : vector<32x8xf32>
    %c7_i32 = arith.constant 7 : i32
    %59 = arith.index_cast %c7_i32 : i32 to index
    %c0_10 = arith.constant 0 : index
    %60 = vector.load %arg2[%59, %c0_10] : memref<8x8xi32, #tpu.memory_space<vmem>>, vector<1x8xi32>
    %61 = vector.broadcast %60 : vector<1x8xi32> to vector<32x8xi32>
    %62 = arith.cmpi eq, %61, %8 : vector<32x8xi32>
    %63 = arith.extui %62 : vector<32x8xi1> to vector<32x8xi32>
    %64 = arith.sitofp %63 : vector<32x8xi32> to vector<32x8xf32>
    %65 = arith.addf %58, %64 : vector<32x8xf32>
    %c8_i32 = arith.constant 8 : i32
    %c0_11 = arith.constant 0 : index
    %c0_12 = arith.constant 0 : index
    %66 = vector.load %arg3[%c0_11, %c0_12] : memref<128x128xf32, #tpu.memory_space<vmem>>, vector<32x128xf32>
    %cst_13 = arith.constant dense<0.000000e+00> : vector<8x128xf32>
    %67 = tpu.matmul %65, %66, %cst_13 {dimension_numbers = #tpu.dot_dimension_numbers<[0], [0], [1], [1], [0, 1, 1, 1], [], []>} : vector<32x8xf32>, vector<32x128xf32>, vector<8x128xf32> -> vector<8x128xf32>
    %68 = arith.addf %4, %67 : vector<8x128xf32>
    %69 = tpu.iota {dimensions = array<i32: 0>} : vector<32x8xi32>
    %c32_i32 = arith.constant 32 : i32
    %70 = arith.addi %0, %c32_i32 : i32
    %71 = vector.broadcast %70 : i32 to vector<32x8xi32>
    %72 = arith.addi %69, %71 : vector<32x8xi32>
    %cst_14 = arith.constant 0.000000e+00 : f32
    %73 = vector.broadcast %cst_14 : f32 to vector<32x8xf32>
    %c0_i32_15 = arith.constant 0 : i32
    %74 = arith.index_cast %c0_i32_15 : i32 to index
    %c0_16 = arith.constant 0 : index
    %75 = vector.load %arg2[%74, %c0_16] : memref<8x8xi32, #tpu.memory_space<vmem>>, vector<1x8xi32>
    %76 = vector.broadcast %75 : vector<1x8xi32> to vector<32x8xi32>
    %77 = arith.cmpi eq, %76, %72 : vector<32x8xi32>
    %78 = arith.extui %77 : vector<32x8xi1> to vector<32x8xi32>
    %79 = arith.sitofp %78 : vector<32x8xi32> to vector<32x8xf32>
    %80 = arith.addf %73, %79 : vector<32x8xf32>
    %c1_i32_17 = arith.constant 1 : i32
    %81 = arith.index_cast %c1_i32_17 : i32 to index
    %c0_18 = arith.constant 0 : index
    %82 = vector.load %arg2[%81, %c0_18] : memref<8x8xi32, #tpu.memory_space<vmem>>, vector<1x8xi32>
    %83 = vector.broadcast %82 : vector<1x8xi32> to vector<32x8xi32>
    %84 = arith.cmpi eq, %83, %72 : vector<32x8xi32>
    %85 = arith.extui %84 : vector<32x8xi1> to vector<32x8xi32>
    %86 = arith.sitofp %85 : vector<32x8xi32> to vector<32x8xf32>
    %87 = arith.addf %80, %86 : vector<32x8xf32>
    %c2_i32_19 = arith.constant 2 : i32
    %88 = arith.index_cast %c2_i32_19 : i32 to index
    %c0_20 = arith.constant 0 : index
    %89 = vector.load %arg2[%88, %c0_20] : memref<8x8xi32, #tpu.memory_space<vmem>>, vector<1x8xi32>
    %90 = vector.broadcast %89 : vector<1x8xi32> to vector<32x8xi32>
    %91 = arith.cmpi eq, %90, %72 : vector<32x8xi32>
    %92 = arith.extui %91 : vector<32x8xi1> to vector<32x8xi32>
    %93 = arith.sitofp %92 : vector<32x8xi32> to vector<32x8xf32>
    %94 = arith.addf %87, %93 : vector<32x8xf32>
    %c3_i32_21 = arith.constant 3 : i32
    %95 = arith.index_cast %c3_i32_21 : i32 to index
    %c0_22 = arith.constant 0 : index
    %96 = vector.load %arg2[%95, %c0_22] : memref<8x8xi32, #tpu.memory_space<vmem>>, vector<1x8xi32>
    %97 = vector.broadcast %96 : vector<1x8xi32> to vector<32x8xi32>
    %98 = arith.cmpi eq, %97, %72 : vector<32x8xi32>
    %99 = arith.extui %98 : vector<32x8xi1> to vector<32x8xi32>
    %100 = arith.sitofp %99 : vector<32x8xi32> to vector<32x8xf32>
    %101 = arith.addf %94, %100 : vector<32x8xf32>
    %c4_i32_23 = arith.constant 4 : i32
    %102 = arith.index_cast %c4_i32_23 : i32 to index
    %c0_24 = arith.constant 0 : index
    %103 = vector.load %arg2[%102, %c0_24] : memref<8x8xi32, #tpu.memory_space<vmem>>, vector<1x8xi32>
    %104 = vector.broadcast %103 : vector<1x8xi32> to vector<32x8xi32>
    %105 = arith.cmpi eq, %104, %72 : vector<32x8xi32>
    %106 = arith.extui %105 : vector<32x8xi1> to vector<32x8xi32>
    %107 = arith.sitofp %106 : vector<32x8xi32> to vector<32x8xf32>
    %108 = arith.addf %101, %107 : vector<32x8xf32>
    %c5_i32_25 = arith.constant 5 : i32
    %109 = arith.index_cast %c5_i32_25 : i32 to index
    %c0_26 = arith.constant 0 : index
    %110 = vector.load %arg2[%109, %c0_26] : memref<8x8xi32, #tpu.memory_space<vmem>>, vector<1x8xi32>
    %111 = vector.broadcast %110 : vector<1x8xi32> to vector<32x8xi32>
    %112 = arith.cmpi eq, %111, %72 : vector<32x8xi32>
    %113 = arith.extui %112 : vector<32x8xi1> to vector<32x8xi32>
    %114 = arith.sitofp %113 : vector<32x8xi32> to vector<32x8xf32>
    %115 = arith.addf %108, %114 : vector<32x8xf32>
    %c6_i32_27 = arith.constant 6 : i32
    %116 = arith.index_cast %c6_i32_27 : i32 to index
    %c0_28 = arith.constant 0 : index
    %117 = vector.load %arg2[%116, %c0_28] : memref<8x8xi32, #tpu.memory_space<vmem>>, vector<1x8xi32>
    %118 = vector.broadcast %117 : vector<1x8xi32> to vector<32x8xi32>
    %119 = arith.cmpi eq, %118, %72 : vector<32x8xi32>
    %120 = arith.extui %119 : vector<32x8xi1> to vector<32x8xi32>
    %121 = arith.sitofp %120 : vector<32x8xi32> to vector<32x8xf32>
    %122 = arith.addf %115, %121 : vector<32x8xf32>
    %c7_i32_29 = arith.constant 7 : i32
    %123 = arith.index_cast %c7_i32_29 : i32 to index
    %c0_30 = arith.constant 0 : index
    %124 = vector.load %arg2[%123, %c0_30] : memref<8x8xi32, #tpu.memory_space<vmem>>, vector<1x8xi32>
    %125 = vector.broadcast %124 : vector<1x8xi32> to vector<32x8xi32>
    %126 = arith.cmpi eq, %125, %72 : vector<32x8xi32>
    %127 = arith.extui %126 : vector<32x8xi1> to vector<32x8xi32>
    %128 = arith.sitofp %127 : vector<32x8xi32> to vector<32x8xf32>
    %129 = arith.addf %122, %128 : vector<32x8xf32>
    %c8_i32_31 = arith.constant 8 : i32
    %c32 = arith.constant 32 : index
    %c0_32 = arith.constant 0 : index
    %130 = vector.load %arg3[%c32, %c0_32] : memref<128x128xf32, #tpu.memory_space<vmem>>, vector<32x128xf32>
    %cst_33 = arith.constant dense<0.000000e+00> : vector<8x128xf32>
    %131 = tpu.matmul %129, %130, %cst_33 {dimension_numbers = #tpu.dot_dimension_numbers<[0], [0], [1], [1], [0, 1, 1, 1], [], []>} : vector<32x8xf32>, vector<32x128xf32>, vector<8x128xf32> -> vector<8x128xf32>
    %132 = arith.addf %68, %131 : vector<8x128xf32>
    %133 = tpu.iota {dimensions = array<i32: 0>} : vector<32x8xi32>
    %c64_i32 = arith.constant 64 : i32
    %134 = arith.addi %0, %c64_i32 : i32
    %135 = vector.broadcast %134 : i32 to vector<32x8xi32>
    %136 = arith.addi %133, %135 : vector<32x8xi32>
    %cst_34 = arith.constant 0.000000e+00 : f32
    %137 = vector.broadcast %cst_34 : f32 to vector<32x8xf32>
    %c0_i32_35 = arith.constant 0 : i32
    %138 = arith.index_cast %c0_i32_35 : i32 to index
    %c0_36 = arith.constant 0 : index
    %139 = vector.load %arg2[%138, %c0_36] : memref<8x8xi32, #tpu.memory_space<vmem>>, vector<1x8xi32>
    %140 = vector.broadcast %139 : vector<1x8xi32> to vector<32x8xi32>
    %141 = arith.cmpi eq, %140, %136 : vector<32x8xi32>
    %142 = arith.extui %141 : vector<32x8xi1> to vector<32x8xi32>
    %143 = arith.sitofp %142 : vector<32x8xi32> to vector<32x8xf32>
    %144 = arith.addf %137, %143 : vector<32x8xf32>
    %c1_i32_37 = arith.constant 1 : i32
    %145 = arith.index_cast %c1_i32_37 : i32 to index
    %c0_38 = arith.constant 0 : index
    %146 = vector.load %arg2[%145, %c0_38] : memref<8x8xi32, #tpu.memory_space<vmem>>, vector<1x8xi32>
    %147 = vector.broadcast %146 : vector<1x8xi32> to vector<32x8xi32>
    %148 = arith.cmpi eq, %147, %136 : vector<32x8xi32>
    %149 = arith.extui %148 : vector<32x8xi1> to vector<32x8xi32>
    %150 = arith.sitofp %149 : vector<32x8xi32> to vector<32x8xf32>
    %151 = arith.addf %144, %150 : vector<32x8xf32>
    %c2_i32_39 = arith.constant 2 : i32
    %152 = arith.index_cast %c2_i32_39 : i32 to index
    %c0_40 = arith.constant 0 : index
    %153 = vector.load %arg2[%152, %c0_40] : memref<8x8xi32, #tpu.memory_space<vmem>>, vector<1x8xi32>
    %154 = vector.broadcast %153 : vector<1x8xi32> to vector<32x8xi32>
    %155 = arith.cmpi eq, %154, %136 : vector<32x8xi32>
    %156 = arith.extui %155 : vector<32x8xi1> to vector<32x8xi32>
    %157 = arith.sitofp %156 : vector<32x8xi32> to vector<32x8xf32>
    %158 = arith.addf %151, %157 : vector<32x8xf32>
    %c3_i32_41 = arith.constant 3 : i32
    %159 = arith.index_cast %c3_i32_41 : i32 to index
    %c0_42 = arith.constant 0 : index
    %160 = vector.load %arg2[%159, %c0_42] : memref<8x8xi32, #tpu.memory_space<vmem>>, vector<1x8xi32>
    %161 = vector.broadcast %160 : vector<1x8xi32> to vector<32x8xi32>
    %162 = arith.cmpi eq, %161, %136 : vector<32x8xi32>
    %163 = arith.extui %162 : vector<32x8xi1> to vector<32x8xi32>
    %164 = arith.sitofp %163 : vector<32x8xi32> to vector<32x8xf32>
    %165 = arith.addf %158, %164 : vector<32x8xf32>
    %c4_i32_43 = arith.constant 4 : i32
    %166 = arith.index_cast %c4_i32_43 : i32 to index
    %c0_44 = arith.constant 0 : index
    %167 = vector.load %arg2[%166, %c0_44] : memref<8x8xi32, #tpu.memory_space<vmem>>, vector<1x8xi32>
    %168 = vector.broadcast %167 : vector<1x8xi32> to vector<32x8xi32>
    %169 = arith.cmpi eq, %168, %136 : vector<32x8xi32>
    %170 = arith.extui %169 : vector<32x8xi1> to vector<32x8xi32>
    %171 = arith.sitofp %170 : vector<32x8xi32> to vector<32x8xf32>
    %172 = arith.addf %165, %171 : vector<32x8xf32>
    %c5_i32_45 = arith.constant 5 : i32
    %173 = arith.index_cast %c5_i32_45 : i32 to index
    %c0_46 = arith.constant 0 : index
    %174 = vector.load %arg2[%173, %c0_46] : memref<8x8xi32, #tpu.memory_space<vmem>>, vector<1x8xi32>
    %175 = vector.broadcast %174 : vector<1x8xi32> to vector<32x8xi32>
    %176 = arith.cmpi eq, %175, %136 : vector<32x8xi32>
    %177 = arith.extui %176 : vector<32x8xi1> to vector<32x8xi32>
    %178 = arith.sitofp %177 : vector<32x8xi32> to vector<32x8xf32>
    %179 = arith.addf %172, %178 : vector<32x8xf32>
    %c6_i32_47 = arith.constant 6 : i32
    %180 = arith.index_cast %c6_i32_47 : i32 to index
    %c0_48 = arith.constant 0 : index
    %181 = vector.load %arg2[%180, %c0_48] : memref<8x8xi32, #tpu.memory_space<vmem>>, vector<1x8xi32>
    %182 = vector.broadcast %181 : vector<1x8xi32> to vector<32x8xi32>
    %183 = arith.cmpi eq, %182, %136 : vector<32x8xi32>
    %184 = arith.extui %183 : vector<32x8xi1> to vector<32x8xi32>
    %185 = arith.sitofp %184 : vector<32x8xi32> to vector<32x8xf32>
    %186 = arith.addf %179, %185 : vector<32x8xf32>
    %c7_i32_49 = arith.constant 7 : i32
    %187 = arith.index_cast %c7_i32_49 : i32 to index
    %c0_50 = arith.constant 0 : index
    %188 = vector.load %arg2[%187, %c0_50] : memref<8x8xi32, #tpu.memory_space<vmem>>, vector<1x8xi32>
    %189 = vector.broadcast %188 : vector<1x8xi32> to vector<32x8xi32>
    %190 = arith.cmpi eq, %189, %136 : vector<32x8xi32>
    %191 = arith.extui %190 : vector<32x8xi1> to vector<32x8xi32>
    %192 = arith.sitofp %191 : vector<32x8xi32> to vector<32x8xf32>
    %193 = arith.addf %186, %192 : vector<32x8xf32>
    %c8_i32_51 = arith.constant 8 : i32
    %c64 = arith.constant 64 : index
    %c0_52 = arith.constant 0 : index
    %194 = vector.load %arg3[%c64, %c0_52] : memref<128x128xf32, #tpu.memory_space<vmem>>, vector<32x128xf32>
    %cst_53 = arith.constant dense<0.000000e+00> : vector<8x128xf32>
    %195 = tpu.matmul %193, %194, %cst_53 {dimension_numbers = #tpu.dot_dimension_numbers<[0], [0], [1], [1], [0, 1, 1, 1], [], []>} : vector<32x8xf32>, vector<32x128xf32>, vector<8x128xf32> -> vector<8x128xf32>
    %196 = arith.addf %132, %195 : vector<8x128xf32>
    %197 = tpu.iota {dimensions = array<i32: 0>} : vector<32x8xi32>
    %c96_i32 = arith.constant 96 : i32
    %198 = arith.addi %0, %c96_i32 : i32
    %199 = vector.broadcast %198 : i32 to vector<32x8xi32>
    %200 = arith.addi %197, %199 : vector<32x8xi32>
    %cst_54 = arith.constant 0.000000e+00 : f32
    %201 = vector.broadcast %cst_54 : f32 to vector<32x8xf32>
    %c0_i32_55 = arith.constant 0 : i32
    %202 = arith.index_cast %c0_i32_55 : i32 to index
    %c0_56 = arith.constant 0 : index
    %203 = vector.load %arg2[%202, %c0_56] : memref<8x8xi32, #tpu.memory_space<vmem>>, vector<1x8xi32>
    %204 = vector.broadcast %203 : vector<1x8xi32> to vector<32x8xi32>
    %205 = arith.cmpi eq, %204, %200 : vector<32x8xi32>
    %206 = arith.extui %205 : vector<32x8xi1> to vector<32x8xi32>
    %207 = arith.sitofp %206 : vector<32x8xi32> to vector<32x8xf32>
    %208 = arith.addf %201, %207 : vector<32x8xf32>
    %c1_i32_57 = arith.constant 1 : i32
    %209 = arith.index_cast %c1_i32_57 : i32 to index
    %c0_58 = arith.constant 0 : index
    %210 = vector.load %arg2[%209, %c0_58] : memref<8x8xi32, #tpu.memory_space<vmem>>, vector<1x8xi32>
    %211 = vector.broadcast %210 : vector<1x8xi32> to vector<32x8xi32>
    %212 = arith.cmpi eq, %211, %200 : vector<32x8xi32>
    %213 = arith.extui %212 : vector<32x8xi1> to vector<32x8xi32>
    %214 = arith.sitofp %213 : vector<32x8xi32> to vector<32x8xf32>
    %215 = arith.addf %208, %214 : vector<32x8xf32>
    %c2_i32_59 = arith.constant 2 : i32
    %216 = arith.index_cast %c2_i32_59 : i32 to index
    %c0_60 = arith.constant 0 : index
    %217 = vector.load %arg2[%216, %c0_60] : memref<8x8xi32, #tpu.memory_space<vmem>>, vector<1x8xi32>
    %218 = vector.broadcast %217 : vector<1x8xi32> to vector<32x8xi32>
    %219 = arith.cmpi eq, %218, %200 : vector<32x8xi32>
    %220 = arith.extui %219 : vector<32x8xi1> to vector<32x8xi32>
    %221 = arith.sitofp %220 : vector<32x8xi32> to vector<32x8xf32>
    %222 = arith.addf %215, %221 : vector<32x8xf32>
    %c3_i32_61 = arith.constant 3 : i32
    %223 = arith.index_cast %c3_i32_61 : i32 to index
    %c0_62 = arith.constant 0 : index
    %224 = vector.load %arg2[%223, %c0_62] : memref<8x8xi32, #tpu.memory_space<vmem>>, vector<1x8xi32>
    %225 = vector.broadcast %224 : vector<1x8xi32> to vector<32x8xi32>
    %226 = arith.cmpi eq, %225, %200 : vector<32x8xi32>
    %227 = arith.extui %226 : vector<32x8xi1> to vector<32x8xi32>
    %228 = arith.sitofp %227 : vector<32x8xi32> to vector<32x8xf32>
    %229 = arith.addf %222, %228 : vector<32x8xf32>
    %c4_i32_63 = arith.constant 4 : i32
    %230 = arith.index_cast %c4_i32_63 : i32 to index
    %c0_64 = arith.constant 0 : index
    %231 = vector.load %arg2[%230, %c0_64] : memref<8x8xi32, #tpu.memory_space<vmem>>, vector<1x8xi32>
    %232 = vector.broadcast %231 : vector<1x8xi32> to vector<32x8xi32>
    %233 = arith.cmpi eq, %232, %200 : vector<32x8xi32>
    %234 = arith.extui %233 : vector<32x8xi1> to vector<32x8xi32>
    %235 = arith.sitofp %234 : vector<32x8xi32> to vector<32x8xf32>
    %236 = arith.addf %229, %235 : vector<32x8xf32>
    %c5_i32_65 = arith.constant 5 : i32
    %237 = arith.index_cast %c5_i32_65 : i32 to index
    %c0_66 = arith.constant 0 : index
    %238 = vector.load %arg2[%237, %c0_66] : memref<8x8xi32, #tpu.memory_space<vmem>>, vector<1x8xi32>
    %239 = vector.broadcast %238 : vector<1x8xi32> to vector<32x8xi32>
    %240 = arith.cmpi eq, %239, %200 : vector<32x8xi32>
    %241 = arith.extui %240 : vector<32x8xi1> to vector<32x8xi32>
    %242 = arith.sitofp %241 : vector<32x8xi32> to vector<32x8xf32>
    %243 = arith.addf %236, %242 : vector<32x8xf32>
    %c6_i32_67 = arith.constant 6 : i32
    %244 = arith.index_cast %c6_i32_67 : i32 to index
    %c0_68 = arith.constant 0 : index
    %245 = vector.load %arg2[%244, %c0_68] : memref<8x8xi32, #tpu.memory_space<vmem>>, vector<1x8xi32>
    %246 = vector.broadcast %245 : vector<1x8xi32> to vector<32x8xi32>
    %247 = arith.cmpi eq, %246, %200 : vector<32x8xi32>
    %248 = arith.extui %247 : vector<32x8xi1> to vector<32x8xi32>
    %249 = arith.sitofp %248 : vector<32x8xi32> to vector<32x8xf32>
    %250 = arith.addf %243, %249 : vector<32x8xf32>
    %c7_i32_69 = arith.constant 7 : i32
    %251 = arith.index_cast %c7_i32_69 : i32 to index
    %c0_70 = arith.constant 0 : index
    %252 = vector.load %arg2[%251, %c0_70] : memref<8x8xi32, #tpu.memory_space<vmem>>, vector<1x8xi32>
    %253 = vector.broadcast %252 : vector<1x8xi32> to vector<32x8xi32>
    %254 = arith.cmpi eq, %253, %200 : vector<32x8xi32>
    %255 = arith.extui %254 : vector<32x8xi1> to vector<32x8xi32>
    %256 = arith.sitofp %255 : vector<32x8xi32> to vector<32x8xf32>
    %257 = arith.addf %250, %256 : vector<32x8xf32>
    %c8_i32_71 = arith.constant 8 : i32
    %c96 = arith.constant 96 : index
    %c0_72 = arith.constant 0 : index
    %258 = vector.load %arg3[%c96, %c0_72] : memref<128x128xf32, #tpu.memory_space<vmem>>, vector<32x128xf32>
    %cst_73 = arith.constant dense<0.000000e+00> : vector<8x128xf32>
    %259 = tpu.matmul %257, %258, %cst_73 {dimension_numbers = #tpu.dot_dimension_numbers<[0], [0], [1], [1], [0, 1, 1, 1], [], []>} : vector<32x8xf32>, vector<32x128xf32>, vector<8x128xf32> -> vector<8x128xf32>
    %260 = arith.addf %196, %259 : vector<8x128xf32>
    %c0_74 = arith.constant 0 : index
    %c0_75 = arith.constant 0 : index
    %261 = vector.load %arg7[%c0_74, %c0_75] : memref<8x128xf32, #tpu.memory_space<vmem>>, vector<8x128xf32>
    %262 = arith.addf %261, %260 : vector<8x128xf32>
    %c0_76 = arith.constant 0 : index
    %c0_77 = arith.constant 0 : index
    %263 = vector.load %arg7[%c0_76, %c0_77] : memref<8x128xf32, #tpu.memory_space<vmem>>, vector<8x128xf32>
    tpu.vector_store %arg7[%c0_76, %c0_77], %262 {strides = array<i32>} : memref<8x128xf32, #tpu.memory_space<vmem>>, vector<8x128xf32>,
    %c0_i32_78 = arith.constant 0 : i32
    %264 = arith.cmpi eq, %arg1, %c0_i32_78 : i32
    %265 = arith.extui %264 : i1 to i32
    %c0_i32_79 = arith.constant 0 : i32
    %266 = arith.cmpi ne, %265, %c0_i32_79 : i32
    scf.if %266 {
      %c0_80 = arith.constant 0 : index
      %c0_81 = arith.constant 0 : index
      %267 = vector.load %arg7[%c0_80, %c0_81] : memref<8x128xf32, #tpu.memory_space<vmem>>, vector<8x128xf32>
      %c0_82 = arith.constant 0 : index
      %c0_83 = arith.constant 0 : index
      %268 = vector.load %arg4[%c0_82, %c0_83] : memref<128x128xf32, #tpu.memory_space<vmem>>, vector<128x128xf32>
      %cst_84 = arith.constant dense<0.000000e+00> : vector<8x128xf32>
      %269 = tpu.matmul %267, %268, %cst_84 {dimension_numbers = #tpu.dot_dimension_numbers<[1], [0], [0], [1], [0, 0, 1, 1], [], []>} : vector<8x128xf32>, vector<128x128xf32>, vector<8x128xf32> -> vector<8x128xf32>
      %c0_85 = arith.constant 0 : index
      %c0_86 = arith.constant 0 : index
      %270 = vector.load %arg5[%c0_85, %c0_86] : memref<1x128xf32, #tpu.memory_space<vmem>>, vector<1x128xf32>
      %271 = vector.broadcast %270 : vector<1x128xf32> to vector<8x128xf32>
      %272 = arith.addf %269, %271 : vector<8x128xf32>
      %c0_87 = arith.constant 0 : index
      %c0_88 = arith.constant 0 : index
      %273 = vector.load %arg6[%c0_87, %c0_88] : memref<8x128xf32, #tpu.memory_space<vmem>>, vector<8x128xf32>
      tpu.vector_store %arg6[%c0_87, %c0_88], %272 {strides = array<i32>} : memref<8x128xf32, #tpu.memory_space<vmem>>, vector<8x128xf32>,
    } else {
    }
    return
  }
  func.func @transform_0(%arg0: i32, %arg1: i32) -> (i32, i32) {
    %c0_i32 = arith.constant 0 : i32
    %c0_i32_0 = arith.constant 0 : i32
    return %c0_i32, %arg0 : i32, i32
  }
  func.func @transform_1(%arg0: i32, %arg1: i32) -> (i32, i32) {
    %c0_i32 = arith.constant 0 : i32
    %c0_i32_0 = arith.constant 0 : i32
    return %arg1, %c0_i32 : i32, i32
  }
  func.func @transform_2(%arg0: i32, %arg1: i32) -> (i32, i32) {
    %c0_i32 = arith.constant 0 : i32
    %c0_i32_0 = arith.constant 0 : i32
    %c0_i32_1 = arith.constant 0 : i32
    return %c0_i32, %c0_i32_0 : i32, i32
  }
  func.func @transform_3(%arg0: i32, %arg1: i32) -> (i32, i32) {
    %c0_i32 = arith.constant 0 : i32
    %c0_i32_0 = arith.constant 0 : i32
    %c0_i32_1 = arith.constant 0 : i32
    return %c0_i32, %c0_i32_0 : i32, i32
  }
  func.func @transform_4(%arg0: i32, %arg1: i32) -> (i32, i32) {
    %c0_i32 = arith.constant 0 : i32
    %c0_i32_0 = arith.constant 0 : i32
    return %arg0, %c0_i32 : i32, i32
  }
}

</mosaic_0001>

<bundles_post_ra>
// kernel: tpu_custom_call.1
= control target key start
LH: loop header
LB: loop body
LE: loop exit
PB: predicated region body
PF: predicated region fallthrough
CT: control target
= control target key end

     0   :  { %9 = vsyncpa [#allocation4], 0  ;;  %s2110_s0 = inlined_call_operand.hbm [shape: s32[8,8], index: 0, kind: input, shape index: {}]   ;;  %s2111_s1 = inlined_call_operand.hbm [shape: f32[128,128], index: 1, kind: input, shape index: {}]   ;;  %s2112_s2 = inlined_call_operand.hbm [shape: f32[128,128], index: 2, kind: input, shape index: {}]   ;;  %s2113_s3 = inlined_call_operand.vmem [shape: f32[1,128], index: 3, kind: input, shape index: {}]   ;;  %s2114_s4 = inlined_call_operand.hbm [shape: f32[8,128], index: 4, kind: output, shape index: {}]  }
   0x1   :  { %10 = vsyncpa [#allocation7], 0 }
   0x2   :  { %11 = vsyncpa [#allocation5], 0  ;;  %s1550_s15 = smov [#allocation6]  }
   0x3   :  { %s27_s16 = sshll.u32 %s1550_s15, 4  ;;  %s28_s16 = int_to_ptr.vmem [resolvable:$true] %s27_s16 }
   0x4   :  { %s1472_s17 = scalar_lea.vmem %s28_s16, 2048  ;;  %p1477_p1 = scmp.lt.s32.totalorder %s28_s16, %s28_s16 }
   0x5   :  { %p1473_p0 = scmp.ne.s32.totalorder %s28_s16, %s1472_s17  ;;  %p1478_p2 = scmp.lt.s32.totalorder %s1472_s17, %s1472_s17 }
   0x7   :  { %p1479_p3 = por %p1478_p2, %p1477_p1 }
   0x9   :  { %p1480_p4 = pnand %p1479_p3, %p1473_p0 }
   0xb   :  { %1483 = shalt.err (!%p1480_p4)
}
   0xc   :  { %s1551_s18 = smov 128   ;;  %s1552_s19 = smov 8  }
   0xd   :  { %33 = dma.hbm_to_vmem [thread:$0]  %s2111_s1, 2048, %s28_s16, [#allocation7], %s1551_s18, %s1551_s18, %s1552_s19  }
   0xe   :  { %s1553_s22 = smov [#allocation3]   ;;  %s1554_s24 = smov [#allocation8]  }
   0xf   :  { %s18_s23 = sshll.u32 %s1553_s22, 4  ;;  %s39_s25 = sshll.u32 %s1554_s24, 4  ;;  %s19_s23 = int_to_ptr.vmem [resolvable:$true] %s18_s23  ;;  %s40_s25 = int_to_ptr.vmem [resolvable:$true] %s39_s25 }
  0x10   :  { %s1492_s26 = scalar_lea.vmem %s19_s23, 128  ;;  %p1497_p6 = scmp.lt.s32.totalorder %s19_s23, %s19_s23 }
  0x11   :  { %p1493_p5 = scmp.ne.s32.totalorder %s19_s23, %s1492_s26  ;;  %p1498_p7 = scmp.lt.s32.totalorder %s1492_s26, %s1492_s26 }
  0x13   :  { %p1499_p8 = por %p1498_p7, %p1497_p6 }
  0x15   :  { %p1500_p9 = pnand %p1499_p8, %p1493_p5 }
  0x17   :  { %1503 = shalt.err (!%p1500_p9)
}
  0x18   :  { %21 = dma.hbm_to_vmem [thread:$0]  %s2110_s0, 128, %s19_s23, [#allocation4]  }
  0x19   :  { %s1512_s29 = scalar_lea.vmem %s40_s25, 2048  ;;  %p1517_p11 = scmp.lt.s32.totalorder %s40_s25, %s40_s25 }
  0x1a   :  { %p1513_p10 = scmp.ne.s32.totalorder %s40_s25, %s1512_s29  ;;  %p1518_p12 = scmp.lt.s32.totalorder %s1512_s29, %s1512_s29 }
  0x1c   :  { %p1519_p13 = por %p1518_p12, %p1517_p11 }
  0x1e   :  { %p1520_p0 = pnand %p1519_p13, %p1513_p10 }
  0x20   :  { %1523 = shalt.err (!%p1520_p0)
}
  0x21   :  { %45 = dma.hbm_to_vmem [thread:$0]  %s2112_s2, 2048, %s40_s25, [#allocation7], %s1551_s18, %s1551_s18, %s1552_s19  }
  0x22   :  { %1544 = dma.done.wait [#allocation4], 128  }
  0x23   :  { %1545 = vsyncadd [#allocation4], 4294967168 }
  0x24   :  { %1546 = dma.done.wait [#allocation7], 4096  }
  0x25   :  { %1547 = vsyncadd [#allocation7], 4294963200  ;;  %v63_v0 = vlaneseq  ;;  %v1555_v1 = vmov 0.0   ;;  %vm1556_vm0 = vmmov 0   ;;  %v1622_v11 = vld [vmem:[#allocation3] ss:$0 sm:$0xff] }
  0x26   :  { %1377 = vmatprep.subr.mxu1 %v1555_v1  ;;  %1385 = vmatprep.mubr.msk.f32.mxu1 %vm1556_vm0, %v1555_v1  ;;  %v1624_v12 = vld [vmem:[#allocation3 + $0x1] ss:$0 sm:$0xff]  ;;  %v1626_v13 = vld [vmem:[#allocation3 + $0x2] ss:$0 sm:$0xff]  ;;  %v1628_v14 = vld [vmem:[#allocation3 + $0x3] ss:$0 sm:$0xff] }
  0x27   :  { %v1595_v2 = vshrl.u32 %v63_v0, 7  ;;  %1421 = vmatprep.subr.mxu0 %v1555_v1  ;;  %1453 = vmatprep.mubr.msk.f32.mxu0 %vm1556_vm0, %v1555_v1  ;;  %v1630_v15 = vld [vmem:[#allocation3 + $0x4] ss:$0 sm:$0xff]  ;;  %v1632_v16 = vld [vmem:[#allocation3 + $0x5] ss:$0 sm:$0xff]  ;;  %v381_v26 = vld [vmem:[#allocation6 + $0x30] sm:$0xff] }
  0x28   :  { %v1639_v17 = vld [vmem:[#allocation3 + $0x6] ss:$0 sm:$0xff]  ;;  %v1641_v18 = vld [vmem:[#allocation3 + $0x7] ss:$0 sm:$0xff]  ;;  %v380_v32 = vld [vmem:[#allocation6 + $0x28] sm:$0xff]  ;;  %s1557_s5 = smov [#allocation9]  }
  0x29   :  { %v247_v3 = vadd.s32 32, %v1595_v2  ;;  %v1602_v4 = vadd.s32 8, %v1595_v2  ;;  %v1605_v5 = vadd.s32 16, %v1595_v2  ;;  %v1608_v6 = vadd.s32 24, %v1595_v2  ;;  %v382_v25 = vld [vmem:[#allocation6 + $0x38] sm:$0xff]  ;;  %v379_v37 = vld [vmem:[#allocation6 + $0x20] sm:$0xff] }
  0x2a   :  { %v1617_v9 = vadd.s32 64, %v1595_v2  ;;  %v1620_v10 = vadd.s32 96, %v1595_v2  ;;  %1378 = vmatpush3.msra.mxu1 %v382_v25  ;;  %s1189_s6 = sshll.u32 %s1557_s5, 4  ;;  %s1190_s6 = int_to_ptr.vmem [resolvable:$true] %s1189_s6 }
  0x2b   :  { %v1611_v7 = vadd.s32 32, %v1602_v4  ;;  %v1614_v8 = vadd.s32 32, %v1605_v5  ;;  %vm251_vm1 = vcmp.eq.s32.totalorder %v1622_v11, %v247_v3  ;;  %vm267_vm2 = vcmp.eq.s32.totalorder %v1624_v12, %v247_v3  ;;  %1379 = vmatprep.subr.mxu1 %v1555_v1  ;;  %s1524_s7 = scalar_lea.vmem %s1190_s6, 128  ;;  %p1529_p2 = scmp.lt.s32.totalorder %s1190_s6, %s1190_s6 }
  0x2c   :  { %vm283_vm3 = vcmp.eq.s32.totalorder %v1626_v13, %v247_v3  ;;  %v1239_v19 = vsel %vm251_vm1, 1.0, %v1555_v1  ;;  %v1243_v20 = vsel %vm267_vm2, 1.0, %v1555_v1  ;;  %vm299_vm5 = vcmp.eq.s32.totalorder %v1628_v14, %v247_v3  ;;  %1380 = vmatpush3.msra.mxu1 %v381_v26  ;;  %p1525_p1 = scmp.ne.s32.totalorder %s1190_s6, %s1524_s7  ;;  %p1530_p3 = scmp.lt.s32.totalorder %s1524_s7, %s1524_s7 }
  0x2d   :  { %vm252_vm4 = vcmp.eq.s32.totalorder %v1622_v11, %v1611_v7  ;;  %vm315_vm6 = vcmp.eq.s32.totalorder %v1630_v15, %v247_v3  ;;  %v279_v21 = vadd.f32 %v1243_v20, %v1239_v19  ;;  %v1247_v22 = vsel %vm283_vm3, 1.0, %v1555_v1  ;;  %1381 = vmatprep.subr.mxu1 %v1555_v1 }
  0x2e   :  { %v1649_v23 = vadd.s32 32, %v1608_v6  ;;  %v1652_v24 = vadd.s32 64, %v1602_v4  ;;  %v1251_v27 = vsel %vm299_vm5, 1.0, %v1555_v1  ;;  %v1255_v28 = vsel %vm315_vm6, 1.0, %v1555_v1  ;;  %1382 = vmatpush3.msra.mxu1 %v380_v32  ;;  %p1531_p4 = por %p1530_p3, %p1529_p2 }
  0x2f   :  { %vm331_vm7 = vcmp.eq.s32.totalorder %v1632_v16, %v247_v3  ;;  %vm347_vm8 = vcmp.eq.s32.totalorder %v1639_v17, %v247_v3  ;;  %v295_v29 = vadd.f32 %v1247_v22, %v279_v21  ;;  %vm363_vm9 = vcmp.eq.s32.totalorder %v1641_v18, %v247_v3  ;;  %1383 = vmatprep.subr.mxu1 %v1555_v1 }
  0x30   :  { %v1259_v30 = vsel %vm331_vm7, 1.0, %v1555_v1  ;;  %v1240_v31 = vsel %vm252_vm4, 1.0, %v1555_v1  ;;  %vm268_vm10 = vcmp.eq.s32.totalorder %v1624_v12, %v1611_v7  ;;  %vm284_vm11 = vcmp.eq.s32.totalorder %v1626_v13, %v1611_v7  ;;  %1384 = vmatpush3.msra.mxu1 %v379_v37  ;;  %p1532_p5 = pnand %p1531_p4, %p1525_p1 }
  0x31   :  { %vm300_vm12 = vcmp.eq.s32.totalorder %v1628_v14, %v1611_v7  ;;  %vm316_vm13 = vcmp.eq.s32.totalorder %v1630_v15, %v1611_v7  ;;  %v311_v33 = vadd.f32 %v1251_v27, %v295_v29  ;;  %v1263_v34 = vsel %vm347_vm8, 1.0, %v1555_v1  ;;  %1388 = vmatprep.subr.mxu1 %v1555_v1 }
  0x32   :  { %v1244_v35 = vsel %vm268_vm10, 1.0, %v1555_v1  ;;  %v1248_v36 = vsel %vm284_vm11, 1.0, %v1555_v1  ;;  %v1267_v38 = vsel %vm363_vm9, 1.0, %v1555_v1  ;;  %v1252_v40 = vsel %vm300_vm12, 1.0, %v1555_v1 }
  0x33   :  { %v280_v39 = vadd.f32 %v1244_v35, %v1240_v31  ;;  %vm332_vm14 = vcmp.eq.s32.totalorder %v1632_v16, %v1611_v7  ;;  %v327_v41 = vadd.f32 %v1255_v28, %v311_v33  ;;  %v1256_v42 = vsel %vm316_vm13, 1.0, %v1555_v1 }
  0x34   :  { %v1260_v43 = vsel %vm332_vm14, 1.0, %v1555_v1  ;;  %vm348_vm15 = vcmp.eq.s32.totalorder %v1639_v17, %v1611_v7  ;;  %vm364_vm1 = vcmp.eq.s32.totalorder %v1641_v18, %v1611_v7  ;;  %vm78_vm2 = vcmp.eq.s32.totalorder %v1622_v11, %v1595_v2 }
  0x35   :  { %v296_v44 = vadd.f32 %v1248_v36, %v280_v39  ;;  %vm99_vm3 = vcmp.eq.s32.totalorder %v1624_v12, %v1595_v2  ;;  %v343_v45 = vadd.f32 %v1259_v30, %v327_v41  ;;  %v1200_v46 = vsel %vm78_vm2, 1.0, %v1555_v1 }
  0x36   :  { %v1205_v47 = vsel %vm99_vm3, 1.0, %v1555_v1  ;;  %vm120_vm4 = vcmp.eq.s32.totalorder %v1626_v13, %v1595_v2  ;;  %vm141_vm5 = vcmp.eq.s32.totalorder %v1628_v14, %v1595_v2  ;;  %vm162_vm6 = vcmp.eq.s32.totalorder %v1630_v15, %v1595_v2 }
  0x37   :  { %v312_v48 = vadd.f32 %v1252_v40, %v296_v44  ;;  %v111_v49 = vadd.f32 %v1205_v47, %v1200_v46  ;;  %v1210_v50 = vsel %vm120_vm4, 1.0, %v1555_v1  ;;  %v359_v51 = vadd.f32 %v1263_v34, %v343_v45 }
  0x38   :  { %v1215_v52 = vsel %vm141_vm5, 1.0, %v1555_v1  ;;  %vm183_vm7 = vcmp.eq.s32.totalorder %v1632_v16, %v1595_v2  ;;  %v1264_v54 = vsel %vm348_vm15, 1.0, %v1555_v1  ;;  %v1268_v55 = vsel %vm364_vm1, 1.0, %v1555_v1 }
  0x39   :  { %v328_v53 = vadd.f32 %v1256_v42, %v312_v48  ;;  %v132_v56 = vadd.f32 %v1210_v50, %v111_v49  ;;  %v375_v57 = vadd.f32 %v1267_v38, %v359_v51  ;;  %v1220_v58 = vsel %vm162_vm6, 1.0, %v1555_v1 }
  0x3a   :  { %v1225_v59 = vsel %vm183_vm7, 1.0, %v1555_v1  ;;  %vm253_vm8 = vcmp.eq.s32.totalorder %v1622_v11, %v1614_v8  ;;  %vm204_vm9 = vcmp.eq.s32.totalorder %v1639_v17, %v1595_v2  ;;  %vm225_vm10 = vcmp.eq.s32.totalorder %v1641_v18, %v1595_v2 }
  0x3b   :  { %v344_v60 = vadd.f32 %v1260_v43, %v328_v53  ;;  %v153_v61 = vadd.f32 %v1215_v52, %v132_v56  ;;  %383 = vxpose.xlu0.b32.start [1/4] (short) (narrow) %v375_v57, 8  ;;  %v1241_v62 = vsel %vm253_vm8, 1.0, %v1555_v1  ;;  %vm269_vm11 = vcmp.eq.s32.totalorder %v1624_v12, %v1614_v8 }
  0x3c   :  { %vm285_vm12 = vcmp.eq.s32.totalorder %v1626_v13, %v1614_v8  ;;  %vm301_vm13 = vcmp.eq.s32.totalorder %v1628_v14, %v1614_v8  ;;  %v1245_v3 = vsel %vm269_vm11, 1.0, %v1555_v1  ;;  %v1230_v19 = vsel %vm204_vm9, 1.0, %v1555_v1 }
  0x3d   :  { %v360_v63 = vadd.f32 %v1264_v54, %v344_v60  ;;  %v174_v0 = vadd.f32 %v1220_v58, %v153_v61  ;;  %v1249_v7 = vsel %vm285_vm12, 1.0, %v1555_v1  ;;  %v281_v20 = vadd.f32 %v1245_v3, %v1241_v62 }
  0x3e   :  { %vm317_vm14 = vcmp.eq.s32.totalorder %v1630_v15, %v1614_v8  ;;  %vm333_vm15 = vcmp.eq.s32.totalorder %v1632_v16, %v1614_v8  ;;  %v1235_v25 = vsel %vm225_vm10, 1.0, %v1555_v1  ;;  %v1253_v26 = vsel %vm301_vm13, 1.0, %v1555_v1 }
  0x3f   :  { %v376_v21 = vadd.f32 %v1268_v55, %v360_v63  ;;  %v195_v22 = vadd.f32 %v1225_v59, %v174_v0  ;;  %v297_v27 = vadd.f32 %v1249_v7, %v281_v20  ;;  %v1257_v28 = vsel %vm317_vm14, 1.0, %v1555_v1 }
  0x40   :  { %vm349_vm1 = vcmp.eq.s32.totalorder %v1639_v17, %v1614_v8  ;;  %vm79_vm2 = vcmp.eq.s32.totalorder %v1622_v11, %v1602_v4  ;;  %v1261_v30 = vsel %vm333_vm15, 1.0, %v1555_v1  ;;  %vm365_vm3 = vcmp.eq.s32.totalorder %v1641_v18, %v1614_v8 }
  0x41   :  { %384 = vxpose.xlu0.b32.cont [2/4] (short) (narrow) %v376_v21, 8  ;;  %v216_v29 = vadd.f32 %v1230_v19, %v195_v22  ;;  %v1201_v2 = vsel %vm79_vm2, 1.0, %v1555_v1  ;;  %v313_v31 = vadd.f32 %v1253_v26, %v297_v27  ;;  %vm100_vm4 = vcmp.eq.s32.totalorder %v1624_v12, %v1602_v4 }
  0x42   :  { %vm121_vm5 = vcmp.eq.s32.totalorder %v1626_v13, %v1602_v4  ;;  %vm142_vm6 = vcmp.eq.s32.totalorder %v1628_v14, %v1602_v4  ;;  %v1265_v33 = vsel %vm349_vm1, 1.0, %v1555_v1  ;;  %v1206_v34 = vsel %vm100_vm4, 1.0, %v1555_v1 }
  0x43   :  { %v237_v32 = vadd.f32 %v1235_v25, %v216_v29  ;;  %v1211_v35 = vsel %vm121_vm5, 1.0, %v1555_v1  ;;  %v329_v8 = vadd.f32 %v1257_v28, %v313_v31  ;;  %v112_v36 = vadd.f32 %v1206_v34, %v1201_v2 }
  0x44   :  { %vm163_vm7 = vcmp.eq.s32.totalorder %v1630_v15, %v1602_v4  ;;  %vm184_vm8 = vcmp.eq.s32.totalorder %v1632_v16, %v1602_v4  ;;  %v1269_v37 = vsel %vm365_vm3, 1.0, %v1555_v1  ;;  %v1216_v38 = vsel %vm142_vm6, 1.0, %v1555_v1 }
  0x45   :  { %489 = vxpose.xlu1.b32.start [1/4] (short) (narrow) %v237_v32, 8  ;;  %v1221_v39 = vsel %vm163_vm7, 1.0, %v1555_v1  ;;  %v1226_v40 = vsel %vm184_vm8, 1.0, %v1555_v1  ;;  %v345_v41 = vadd.f32 %v1261_v30, %v329_v8  ;;  %v133_v42 = vadd.f32 %v1211_v35, %v112_v36 }
  0x46   :  { %vm205_vm9 = vcmp.eq.s32.totalorder %v1639_v17, %v1602_v4  ;;  %vm226_vm10 = vcmp.eq.s32.totalorder %v1641_v18, %v1602_v4  ;;  %vm254_vm11 = vcmp.eq.s32.totalorder %v1622_v11, %v1649_v23  ;;  %vm270_vm12 = vcmp.eq.s32.totalorder %v1624_v12, %v1649_v23 }
  0x47   :  { %vm286_vm13 = vcmp.eq.s32.totalorder %v1626_v13, %v1649_v23  ;;  %vm302_vm14 = vcmp.eq.s32.totalorder %v1628_v14, %v1649_v23  ;;  %v361_v43 = vadd.f32 %v1265_v33, %v345_v41  ;;  %v154_v44 = vadd.f32 %v1216_v38, %v133_v42 }
  0x48   :  { %v1242_v45 = vsel %vm254_vm11, 1.0, %v1555_v1  ;;  %v1246_v46 = vsel %vm270_vm12, 1.0, %v1555_v1  ;;  %v1231_v47 = vsel %vm205_vm9, 1.0, %v1555_v1  ;;  %v1250_v49 = vsel %vm286_vm13, 1.0, %v1555_v1 }
  0x49   :  { %v282_v48 = vadd.f32 %v1246_v46, %v1242_v45  ;;  %vm318_vm15 = vcmp.eq.s32.totalorder %v1630_v15, %v1649_v23  ;;  %v377_v50 = vadd.f32 %v1269_v37, %v361_v43  ;;  %v175_v51 = vadd.f32 %v1221_v39, %v154_v44 }
  0x4a   :  { %v1254_v52 = vsel %vm302_vm14, 1.0, %v1555_v1  ;;  %vm334_vm1 = vcmp.eq.s32.totalorder %v1632_v16, %v1649_v23  ;;  %v1236_v53 = vsel %vm226_vm10, 1.0, %v1555_v1  ;;  %v1258_v55 = vsel %vm318_vm15, 1.0, %v1555_v1 }
  0x4b   :  { %v298_v54 = vadd.f32 %v1250_v49, %v282_v48  ;;  %v1262_v56 = vsel %vm334_vm1, 1.0, %v1555_v1  ;;  %385 = vxpose.xlu0.b32.cont [3/4] (short) (narrow) %v377_v50, 8  ;;  %v196_v57 = vadd.f32 %v1226_v40, %v175_v51  ;;  %vm350_vm2 = vcmp.eq.s32.totalorder %v1639_v17, %v1649_v23 }
  0x4c   :  { %vm366_vm3 = vcmp.eq.s32.totalorder %v1641_v18, %v1649_v23  ;;  %vm80_vm4 = vcmp.eq.s32.totalorder %v1622_v11, %v1605_v5  ;;  %vm101_vm5 = vcmp.eq.s32.totalorder %v1624_v12, %v1605_v5  ;;  %vm122_vm6 = vcmp.eq.s32.totalorder %v1626_v13, %v1605_v5 }
  0x4d   :  { %v314_v58 = vadd.f32 %v1254_v52, %v298_v54  ;;  %v1202_v59 = vsel %vm80_vm4, 1.0, %v1555_v1  ;;  %v217_v60 = vadd.f32 %v1231_v47, %v196_v57  ;;  %v1207_v61 = vsel %vm101_vm5, 1.0, %v1555_v1 }
  0x4e   :  { %v1212_v62 = vsel %vm122_vm6, 1.0, %v1555_v1  ;;  %vm143_vm7 = vcmp.eq.s32.totalorder %v1628_v14, %v1605_v5  ;;  %v1266_v63 = vsel %vm350_vm2, 1.0, %v1555_v1  ;;  %v113_v0 = vadd.f32 %v1207_v61, %v1202_v59 }
  0x4f   :  { %v330_v23 = vadd.f32 %v1258_v55, %v314_v58  ;;  %vm164_vm8 = vcmp.eq.s32.totalorder %v1630_v15, %v1605_v5  ;;  %v238_v3 = vadd.f32 %v1236_v53, %v217_v60  ;;  %v1270_v7 = vsel %vm366_vm3, 1.0, %v1555_v1 }
  0x50   :  { %v1217_v19 = vsel %vm143_vm7, 1.0, %v1555_v1  ;;  %vm185_vm9 = vcmp.eq.s32.totalorder %v1632_v16, %v1605_v5  ;;  %v134_v21 = vadd.f32 %v1212_v62, %v113_v0  ;;  %v1222_v22 = vsel %vm164_vm8, 1.0, %v1555_v1 }
  0x51   :  { %v346_v20 = vadd.f32 %v1262_v56, %v330_v23  ;;  %vm206_vm10 = vcmp.eq.s32.totalorder %v1639_v17, %v1605_v5  ;;  %490 = vxpose.xlu1.b32.cont [2/4] (short) (narrow) %v238_v3, 8  ;;  %v1227_v25 = vsel %vm185_vm9, 1.0, %v1555_v1  ;;  %vm600_vm11 = vcmp.eq.s32.totalorder %v1622_v11, %v1617_v9 }
  0x52   :  { %vm616_vm12 = vcmp.eq.s32.totalorder %v1624_v12, %v1617_v9  ;;  %vm632_vm13 = vcmp.eq.s32.totalorder %v1626_v13, %v1617_v9  ;;  %v155_v27 = vadd.f32 %v1217_v19, %v134_v21  ;;  %vm227_vm14 = vcmp.eq.s32.totalorder %v1641_v18, %v1605_v5 }
  0x53   :  { %v362_v26 = vadd.f32 %v1266_v63, %v346_v20  ;;  %v1273_v28 = vsel %vm600_vm11, 1.0, %v1555_v1  ;;  %v1277_v29 = vsel %vm616_vm12, 1.0, %v1555_v1  ;;  %v1281_v30 = vsel %vm632_vm13, 1.0, %v1555_v1 }
  0x54   :  { %vm648_vm15 = vcmp.eq.s32.totalorder %v1628_v14, %v1617_v9  ;;  %vm664_vm1 = vcmp.eq.s32.totalorder %v1630_v15, %v1617_v9  ;;  %v176_v31 = vadd.f32 %v1222_v22, %v155_v27  ;;  %v1232_v32 = vsel %vm206_vm10, 1.0, %v1555_v1 }
  0x55   :  { %v378_v2 = vadd.f32 %v1270_v7, %v362_v26  ;;  %v628_v33 = vadd.f32 %v1277_v29, %v1273_v28  ;;  %v1237_v34 = vsel %vm227_vm14, 1.0, %v1555_v1  ;;  %v1285_v35 = vsel %vm648_vm15, 1.0, %v1555_v1 }
  0x56   :  { %v1289_v8 = vsel %vm664_vm1, 1.0, %v1555_v1  ;;  %vm680_vm2 = vcmp.eq.s32.totalorder %v1632_v16, %v1617_v9  ;;  %v197_v36 = vadd.f32 %v1227_v25, %v176_v31  ;;  %vm696_vm3 = vcmp.eq.s32.totalorder %v1639_v17, %v1617_v9 }
  0x57   :  { %386 = vxpose.xlu0.b32.end [4/4] (short) (narrow) %v378_v2, 8  ;;  %v644_v37 = vadd.f32 %v1281_v30, %v628_v33  ;;  %vm712_vm4 = vcmp.eq.s32.totalorder %v1641_v18, %v1617_v9  ;;  %v1293_v38 = vsel %vm680_vm2, 1.0, %v1555_v1  ;;  %vm81_vm5 = vcmp.eq.s32.totalorder %v1622_v11, %v1608_v6 }
  0x58   :  { %vm102_vm6 = vcmp.eq.s32.totalorder %v1624_v12, %v1608_v6  ;;  %vm123_vm7 = vcmp.eq.s32.totalorder %v1626_v13, %v1608_v6  ;;  %v218_v39 = vadd.f32 %v1232_v32, %v197_v36  ;;  %v1203_v41 = vsel %vm81_vm5, 1.0, %v1555_v1 }
  0x59   :  { %v660_v40 = vadd.f32 %v1285_v35, %v644_v37  ;;  %v1208_v42 = vsel %vm102_vm6, 1.0, %v1555_v1  ;;  %v1213_v44 = vsel %vm123_vm7, 1.0, %v1555_v1  ;;  %vm144_vm8 = vcmp.eq.s32.totalorder %v1628_v14, %v1608_v6 }
  0x5a   :  { %v114_v43 = vadd.f32 %v1208_v42, %v1203_v41  ;;  %vm165_vm9 = vcmp.eq.s32.totalorder %v1630_v15, %v1608_v6  ;;  %v239_v45 = vadd.f32 %v1237_v34, %v218_v39  ;;  %v1297_v47 = vsel %vm696_vm3, 1.0, %v1555_v1 }
  0x5b   :  { %v676_v46 = vadd.f32 %v1289_v8, %v660_v40  ;;  %v1218_v48 = vsel %vm144_vm8, 1.0, %v1555_v1  ;;  %v1301_v49 = vsel %vm712_vm4, 1.0, %v1555_v1  ;;  %v1223_v51 = vsel %vm165_vm9, 1.0, %v1555_v1 }
  0x5c   :  { %v135_v50 = vadd.f32 %v1213_v44, %v114_v43  ;;  %vm186_vm10 = vcmp.eq.s32.totalorder %v1632_v16, %v1608_v6  ;;  %491 = vxpose.xlu1.b32.cont [3/4] (short) (narrow) %v239_v45, 8  ;;  %vm207_vm11 = vcmp.eq.s32.totalorder %v1639_v17, %v1608_v6  ;;  %vm228_vm12 = vcmp.eq.s32.totalorder %v1641_v18, %v1608_v6 }
  0x5d   :  { %v692_v52 = vadd.f32 %v1293_v38, %v676_v46  ;;  %v1228_v53 = vsel %vm186_vm10, 1.0, %v1555_v1  ;;  %vm601_vm13 = vcmp.eq.s32.totalorder %v1622_v11, %v1652_v24  ;;  %vm617_vm14 = vcmp.eq.s32.totalorder %v1624_v12, %v1652_v24 }
  0x5e   :  { %v156_v54 = vadd.f32 %v1218_v48, %v135_v50  ;;  %vm633_vm15 = vcmp.eq.s32.totalorder %v1626_v13, %v1652_v24  ;;  %v1274_v55 = vsel %vm601_vm13, 1.0, %v1555_v1  ;;  %v1278_v56 = vsel %vm617_vm14, 1.0, %v1555_v1 }
  0x5f   :  { %v708_v9 = vadd.f32 %v1297_v47, %v692_v52  ;;  %v1282_v57 = vsel %vm633_vm15, 1.0, %v1555_v1  ;;  %v629_v59 = vadd.f32 %v1278_v56, %v1274_v55  ;;  %vm649_vm1 = vcmp.eq.s32.totalorder %v1628_v14, %v1652_v24 }
  0x60   :  { %v177_v58 = vadd.f32 %v1223_v51, %v156_v54  ;;  %vm665_vm2 = vcmp.eq.s32.totalorder %v1630_v15, %v1652_v24  ;;  %v1233_v61 = vsel %vm207_vm11, 1.0, %v1555_v1  ;;  %v1286_v62 = vsel %vm649_vm1, 1.0, %v1555_v1 }
  0x61   :  { %v724_v60 = vadd.f32 %v1301_v49, %v708_v9  ;;  %vm681_vm3 = vcmp.eq.s32.totalorder %v1632_v16, %v1652_v24  ;;  %v1238_v63 = vsel %vm228_vm12, 1.0, %v1555_v1  ;;  %v645_v0 = vadd.f32 %v1282_v57, %v629_v59 }
  0x62   :  { %v198_v23 = vadd.f32 %v1228_v53, %v177_v58  ;;  %v1290_v3 = vsel %vm665_vm2, 1.0, %v1555_v1  ;;  %v1294_v7 = vsel %vm681_vm3, 1.0, %v1555_v1  ;;  %vm697_vm4 = vcmp.eq.s32.totalorder %v1639_v17, %v1652_v24 }
  0x63   :  { %732 = vxpose.xlu0.b32.start [1/4] (short) (narrow) %v724_v60, 8  ;;  %vm844_vm5 = vcmp.eq.s32.totalorder %v1622_v11, %v1620_v10  ;;  %vm860_vm6 = vcmp.eq.s32.totalorder %v1624_v12, %v1620_v10  ;;  %v661_v20 = vadd.f32 %v1286_v62, %v645_v0  ;;  %vm713_vm7 = vcmp.eq.s32.totalorder %v1641_v18, %v1652_v24 }
  0x64   :  { %v219_v19 = vadd.f32 %v1233_v61, %v198_v23  ;;  %v1306_v21 = vsel %vm844_vm5, 1.0, %v1555_v1  ;;  %v1310_v22 = vsel %vm860_vm6, 1.0, %v1555_v1  ;;  %vm876_vm8 = vcmp.eq.s32.totalorder %v1626_v13, %v1620_v10 }
  0x65   :  { %vm892_vm9 = vcmp.eq.s32.totalorder %v1628_v14, %v1620_v10  ;;  %vm908_vm10 = vcmp.eq.s32.totalorder %v1630_v15, %v1620_v10  ;;  %v677_v26 = vadd.f32 %v1290_v3, %v661_v20  ;;  %v872_v27 = vadd.f32 %v1310_v22, %v1306_v21 }
  0x66   :  { %v240_v25 = vadd.f32 %v1238_v63, %v219_v19  ;;  %v1314_v28 = vsel %vm876_vm8, 1.0, %v1555_v1  ;;  %v1298_v29 = vsel %vm697_vm4, 1.0, %v1555_v1  ;;  %v1318_v30 = vsel %vm892_vm9, 1.0, %v1555_v1 }
  0x67   :  { %vm924_vm11 = vcmp.eq.s32.totalorder %v1632_v16, %v1620_v10  ;;  %vm940_vm12 = vcmp.eq.s32.totalorder %v1639_v17, %v1620_v10  ;;  %v693_v2 = vadd.f32 %v1294_v7, %v677_v26  ;;  %v1302_v31 = vsel %vm713_vm7, 1.0, %v1555_v1 }
  0x68   :  { %492 = vxpose.xlu1.b32.end [4/4] (short) (narrow) %v240_v25, 8  ;;  %v888_v32 = vadd.f32 %v1314_v28, %v872_v27  ;;  %v1322_v33 = vsel %vm908_vm10, 1.0, %v1555_v1  ;;  %v1326_v34 = vsel %vm924_vm11, 1.0, %v1555_v1  ;;  %v1330_v35 = vsel %vm940_vm12, 1.0, %v1555_v1 }
  0x69   :  { %vm956_vm13 = vcmp.eq.s32.totalorder %v1641_v18, %v1620_v10  ;;  %v598_v8 = vadd.s32 64, %v1605_v5  ;;  %v709_v36 = vadd.f32 %v1298_v29, %v693_v2  ;;  %v1935_v38 = vadd.s32 96, %v1602_v4 }
  0x6a   :  { %v904_v37 = vadd.f32 %v1318_v30, %v888_v32  ;;  %v1938_v24 = vadd.s32 64, %v1608_v6  ;;  %v1334_v4 = vsel %vm956_vm13, 1.0, %v1555_v1  ;;  %v1952_v46 = vadd.s32 96, %v1605_v5 }
  0x6b   :  { %vm602_vm14 = vcmp.eq.s32.totalorder %v1622_v11, %v598_v8  ;;  %vm618_vm15 = vcmp.eq.s32.totalorder %v1624_v12, %v598_v8  ;;  %vm634_vm1 = vcmp.eq.s32.totalorder %v1626_v13, %v598_v8  ;;  %vm650_vm2 = vcmp.eq.s32.totalorder %v1628_v14, %v598_v8 }
  0x6c   :  { %v725_v39 = vadd.f32 %v1302_v31, %v709_v36  ;;  %v920_v10 = vadd.f32 %v1322_v33, %v904_v37  ;;  %v1275_v40 = vsel %vm602_vm14, 1.0, %v1555_v1  ;;  %v1279_v41 = vsel %vm618_vm15, 1.0, %v1555_v1 }
  0x6d   :  { %v630_v42 = vadd.f32 %v1279_v41, %v1275_v40  ;;  %v1283_v43 = vsel %vm634_vm1, 1.0, %v1555_v1  ;;  %vm666_vm3 = vcmp.eq.s32.totalorder %v1630_v15, %v598_v8  ;;  %v1287_v45 = vsel %vm650_vm2, 1.0, %v1555_v1 }
  0x6e   :  { %733 = vxpose.xlu0.b32.cont [2/4] (short) (narrow) %v725_v39, 8  ;;  %v936_v44 = vadd.f32 %v1326_v34, %v920_v10  ;;  %vm682_vm4 = vcmp.eq.s32.totalorder %v1632_v16, %v598_v8  ;;  %v1291_v48 = vsel %vm666_vm3, 1.0, %v1555_v1  ;;  %vm698_vm5 = vcmp.eq.s32.totalorder %v1639_v17, %v598_v8 }
  0x6f   :  { %v646_v47 = vadd.f32 %v1283_v43, %v630_v42  ;;  %v1295_v49 = vsel %vm682_vm4, 1.0, %v1555_v1  ;;  %vm714_vm6 = vcmp.eq.s32.totalorder %v1641_v18, %v598_v8  ;;  %vm845_vm7 = vcmp.eq.s32.totalorder %v1622_v11, %v1935_v38 }
  0x70   :  { %v952_v50 = vadd.f32 %v1330_v35, %v936_v44  ;;  %vm861_vm8 = vcmp.eq.s32.totalorder %v1624_v12, %v1935_v38  ;;  %v1307_v5 = vsel %vm845_vm7, 1.0, %v1555_v1  ;;  %vm877_vm9 = vcmp.eq.s32.totalorder %v1626_v13, %v1935_v38 }
  0x71   :  { %v662_v51 = vadd.f32 %v1287_v45, %v646_v47  ;;  %v1311_v52 = vsel %vm861_vm8, 1.0, %v1555_v1  ;;  %v1315_v9 = vsel %vm877_vm9, 1.0, %v1555_v1  ;;  %vm893_vm10 = vcmp.eq.s32.totalorder %v1628_v14, %v1935_v38 }
  0x72   :  { %v968_v53 = vadd.f32 %v1334_v4, %v952_v50  ;;  %v873_v54 = vadd.f32 %v1311_v52, %v1307_v5  ;;  %v1319_v56 = vsel %vm893_vm10, 1.0, %v1555_v1  ;;  %vm909_vm11 = vcmp.eq.s32.totalorder %v1630_v15, %v1935_v38 }
  0x73   :  { %v678_v55 = vadd.f32 %v1291_v48, %v662_v51  ;;  %vm925_vm12 = vcmp.eq.s32.totalorder %v1632_v16, %v1935_v38  ;;  %v1299_v57 = vsel %vm698_vm5, 1.0, %v1555_v1  ;;  %v1303_v58 = vsel %vm714_vm6, 1.0, %v1555_v1  ;;  %v1104_v48 = vld [vmem:[#allocation8 + $0x78] sm:$0xff]  ;;  %v1102_v51 = vld [vmem:[#allocation8 + $0x68] sm:$0xff] }
  0x74   :  { %976 = vxpose.xlu1.b32.start [1/4] (short) (narrow) %v968_v53, 8  ;;  %v889_v59 = vadd.f32 %v1315_v9, %v873_v54  ;;  %v1323_v60 = vsel %vm909_vm11, 1.0, %v1555_v1  ;;  %v1327_v62 = vsel %vm925_vm12, 1.0, %v1555_v1  ;;  %vm941_vm13 = vcmp.eq.s32.totalorder %v1639_v17, %v1935_v38  ;;  %1422 = vmatpush3.msra.mxu0 %v1104_v48 }
  0x75   :  { %v694_v61 = vadd.f32 %v1295_v49, %v678_v55  ;;  %vm603_vm14 = vcmp.eq.s32.totalorder %v1622_v11, %v1938_v24  ;;  %vm957_vm15 = vcmp.eq.s32.totalorder %v1641_v18, %v1935_v38  ;;  %vm619_vm1 = vcmp.eq.s32.totalorder %v1624_v12, %v1938_v24  ;;  %v1103_v49 = vld [vmem:[#allocation8 + $0x70] sm:$0xff]  ;;  %1423 = vmatprep.subr.mxu0 %v1555_v1 }
  0x76   :  { %v905_v23 = vadd.f32 %v1319_v56, %v889_v59  ;;  %v1276_v63 = vsel %vm603_vm14, 1.0, %v1555_v1  ;;  %v1280_v3 = vsel %vm619_vm1, 1.0, %v1555_v1  ;;  %vm635_vm2 = vcmp.eq.s32.totalorder %v1626_v13, %v1938_v24  ;;  %1424 = vmatpush3.msra.mxu0 %v1103_v49 }
  0x77   :  { %v710_v0 = vadd.f32 %v1299_v57, %v694_v61  ;;  %vm651_vm3 = vcmp.eq.s32.totalorder %v1628_v14, %v1938_v24  ;;  %v1331_v19 = vsel %vm941_vm13, 1.0, %v1555_v1  ;;  %v631_v20 = vadd.f32 %v1280_v3, %v1276_v63  ;;  %1425 = vmatprep.subr.mxu0 %v1555_v1  ;;  %v243_v61 = vld [vmem:[#allocation6 + $0x10] sm:$0xff]  ;;  %v729_v3 = vld [vmem:[#allocation6 + $0x48] sm:$0xff] }
  0x78   :  { %v921_v7 = vadd.f32 %v1323_v60, %v905_v23  ;;  %v1284_v21 = vsel %vm635_vm2, 1.0, %v1555_v1  ;;  %v1288_v25 = vsel %vm651_vm3, 1.0, %v1555_v1  ;;  %vm667_vm4 = vcmp.eq.s32.totalorder %v1630_v15, %v1938_v24  ;;  %1426 = vmatpush3.msra.mxu0 %v1102_v51  ;;  %v731_v23 = vld [vmem:[#allocation6 + $0x58] sm:$0xff] }
  0x79   :  { %v726_v22 = vadd.f32 %v1303_v58, %v710_v0  ;;  %vm683_vm5 = vcmp.eq.s32.totalorder %v1632_v16, %v1938_v24  ;;  %v1335_v27 = vsel %vm957_vm15, 1.0, %v1555_v1  ;;  %v647_v28 = vadd.f32 %v1284_v21, %v631_v20  ;;  %1427 = vmatprep.subr.mxu0 %v1555_v1  ;;  %v730_v0 = vld [vmem:[#allocation6 + $0x50] sm:$0xff] }
  0x7a   :  { %v937_v26 = vadd.f32 %v1327_v62, %v921_v7  ;;  %vm699_vm6 = vcmp.eq.s32.totalorder %v1639_v17, %v1938_v24  ;;  %v1292_v29 = vsel %vm667_vm4, 1.0, %v1555_v1  ;;  %v1296_v30 = vsel %vm683_vm5, 1.0, %v1555_v1  ;;  %v241_v62 = vld [vmem:[#allocation6] sm:$0xff]  ;;  %v974_v21 = vld [vmem:[#allocation6 + $0x70] sm:$0xff] }
  0x7b   :  { %734 = vxpose.xlu0.b32.cont [3/4] (short) (narrow) %v726_v22, 8  ;;  %vm846_vm7 = vcmp.eq.s32.totalorder %v1622_v11, %v1952_v46  ;;  %vm862_vm8 = vcmp.eq.s32.totalorder %v1624_v12, %v1952_v46  ;;  %v663_v31 = vadd.f32 %v1288_v25, %v647_v28  ;;  %vm715_vm9 = vcmp.eq.s32.totalorder %v1641_v18, %v1938_v24  ;;  %v728_v7 = vld [vmem:[#allocation6 + $0x40] sm:$0xff]  ;;  %v973_v22 = vld [vmem:[#allocation6 + $0x68] sm:$0xff]  ;;  %v1100_v28 = vld [vmem:[#allocation8 + $0x58] sm:$0xff] }
  0x7c   :  { %v953_v2 = vadd.f32 %v1331_v19, %v937_v26  ;;  %v1308_v32 = vsel %vm846_vm7, 1.0, %v1555_v1  ;;  %v1312_v33 = vsel %vm862_vm8, 1.0, %v1555_v1  ;;  %vm878_vm10 = vcmp.eq.s32.totalorder %v1626_v13, %v1952_v46  ;;  %v975_v19 = vld [vmem:[#allocation6 + $0x78] sm:$0xff]  ;;  %v972_v25 = vld [vmem:[#allocation6 + $0x60] sm:$0xff] }
  0x7d   :  { %vm894_vm11 = vcmp.eq.s32.totalorder %v1628_v14, %v1952_v46  ;;  %vm910_vm12 = vcmp.eq.s32.totalorder %v1630_v15, %v1952_v46  ;;  %v679_v35 = vadd.f32 %v1292_v29, %v663_v31  ;;  %v874_v8 = vadd.f32 %v1312_v33, %v1308_v32  ;;  %v1099_v29 = vld [vmem:[#allocation8 + $0x50] sm:$0xff]  ;;  %v1096_v31 = vld [vmem:[#allocation8 + $0x38] sm:$0xff]  ;;  %v1094_v33 = vld [vmem:[#allocation8 + $0x28] sm:$0xff] }
  0x7e   :  { %v969_v34 = vadd.f32 %v1335_v27, %v953_v2  ;;  %v1316_v36 = vsel %vm878_vm10, 1.0, %v1555_v1  ;;  %v1300_v37 = vsel %vm699_vm6, 1.0, %v1555_v1  ;;  %v1320_v38 = vsel %vm894_vm11, 1.0, %v1555_v1  ;;  %v1101_v27 = vld [vmem:[#allocation8 + $0x60] sm:$0xff]  ;;  %v1095_v32 = vld [vmem:[#allocation8 + $0x30] sm:$0xff] }
  0x7f   :  { %vm926_vm13 = vcmp.eq.s32.totalorder %v1632_v16, %v1952_v46  ;;  %v695_v39 = vadd.f32 %v1296_v30, %v679_v35  ;;  %v890_v10 = vadd.f32 %v1316_v36, %v874_v8  ;;  %v1304_v40 = vsel %vm715_vm9, 1.0, %v1555_v1  ;;  %1428 = vmatpush3.msra.mxu0 %v1101_v27  ;;  %v1098_v30 = vld [vmem:[#allocation8 + $0x48] sm:$0xff]  ;;  %v1097_v2 = vld [vmem:[#allocation8 + $0x40] sm:$0xff]  ;;  %v1092_v35 = vld [vmem:[#allocation8 + $0x18] sm:$0xff] }
  0x80   :  { %977 = vxpose.xlu1.b32.cont [2/4] (short) (narrow) %v969_v34, 8  ;;  %v1324_v41 = vsel %vm910_vm12, 1.0, %v1555_v1  ;;  %vm942_vm14 = vcmp.eq.s32.totalorder %v1639_v17, %v1952_v46  ;;  %v843_v4 = vadd.s32 96, %v1608_v6  ;;  %v1328_v44 = vsel %vm926_vm13, 1.0, %v1555_v1  ;;  %1429 = vmatprep.subr.mxu0 %v1555_v1  ;;  %v1093_v34 = vld [vmem:[#allocation8 + $0x20] sm:$0xff]  ;;  %v1091_v8 = vld [vmem:[#allocation8 + $0x10] sm:$0xff] }
  0x81   :  { %v711_v42 = vadd.f32 %v1300_v37, %v695_v39  ;;  %v906_v43 = vadd.f32 %v1320_v38, %v890_v10  ;;  %vm958_vm15 = vcmp.eq.s32.totalorder %v1641_v18, %v1952_v46  ;;  %v1332_v50 = vsel %vm942_vm14, 1.0, %v1555_v1  ;;  %1430 = vmatpush3.msra.mxu0 %v1100_v28  ;;  %v1090_v36 = vld [vmem:[#allocation8 + $0x8] sm:$0xff]  ;;  %v1089_v37 = vld [vmem:[#allocation8] sm:$0xff] }
  0x82   :  { %vm847_vm1 = vcmp.eq.s32.totalorder %v1622_v11, %v843_v4  ;;  %vm863_vm2 = vcmp.eq.s32.totalorder %v1624_v12, %v843_v4  ;;  %vm879_vm3 = vcmp.eq.s32.totalorder %v1626_v13, %v843_v4  ;;  %vm895_vm4 = vcmp.eq.s32.totalorder %v1628_v14, %v843_v4  ;;  %1431 = vmatprep.subr.mxu0 %v1555_v1 }
  0x83   :  { %v727_v24 = vadd.f32 %v1304_v40, %v711_v42  ;;  %v922_v45 = vadd.f32 %v1324_v41, %v906_v43  ;;  %v1309_v47 = vsel %vm847_vm1, 1.0, %v1555_v1  ;;  %v1313_v6 = vsel %vm863_vm2, 1.0, %v1555_v1  ;;  %1432 = vmatpush3.msra.mxu0 %v1099_v29 }
  0x84   :  { %v875_v11 = vadd.f32 %v1313_v6, %v1309_v47  ;;  %v1317_v12 = vsel %vm879_vm3, 1.0, %v1555_v1  ;;  %vm911_vm5 = vcmp.eq.s32.totalorder %v1630_v15, %v843_v4  ;;  %v1321_v14 = vsel %vm895_vm4, 1.0, %v1555_v1  ;;  %1433 = vmatprep.subr.mxu0 %v1555_v1  ;;  %v1339_v47 = vld [vmem:[%s2113_s3] ss:$0 sm:$0xff] }
  0x85   :  { %735 = vxpose.xlu0.b32.end [4/4] (short) (narrow) %v727_v24, 8  ;;  %v938_v13 = vadd.f32 %v1328_v44, %v922_v45  ;;  %v1336_v5 = vsel %vm958_vm15, 1.0, %v1555_v1  ;;  %vm927_vm6 = vcmp.eq.s32.totalorder %v1632_v16, %v843_v4  ;;  %v1325_v15 = vsel %vm911_vm5, 1.0, %v1555_v1  ;;  %1434 = vmatpush3.msra.mxu0 %v1098_v30 }
  0x86   :  { %v891_v52 = vadd.f32 %v1317_v12, %v875_v11  ;;  %vm943_vm7 = vcmp.eq.s32.totalorder %v1639_v17, %v843_v4  ;;  %v1329_v55 = vsel %vm927_vm6, 1.0, %v1555_v1  ;;  %vm959_vm8 = vcmp.eq.s32.totalorder %v1641_v18, %v843_v4  ;;  %v244_v17 = vld [vmem:[#allocation6 + $0x18] sm:$0xff]  ;;  %v242_v18 = vld [vmem:[#allocation6 + $0x8] sm:$0xff]  ;;  %1435 = vmatprep.subr.mxu0 %v1555_v1 }
  0x87   :  { %v954_v53 = vadd.f32 %v1332_v50, %v938_v13  ;;  %v1333_v16 = vsel %vm943_vm7, 1.0, %v1555_v1  ;;  %v1337_v57 = vsel %vm959_vm8, 1.0, %v1555_v1  ;;  %vm415_vm9 = vcmask 261120   ;;  %1436 = vmatpush3.msra.mxu0 %v1097_v2 }
  0x88   :  { %v907_v54 = vadd.f32 %v1321_v14, %v891_v52  ;;  %1437 = vmatprep.subr.mxu0 %v1555_v1 }
  0x89   :  { %v970_v9 = vadd.f32 %v1336_v5, %v954_v53  ;;  %1438 = vmatpush3.msra.mxu0 %v1096_v31 }
  0x8a   :  { %v923_v46 = vadd.f32 %v1325_v15, %v907_v54  ;;  %1439 = vmatprep.subr.mxu0 %v1555_v1 }
  0x8b   :  { %978 = vxpose.xlu1.b32.cont [3/4] (short) (narrow) %v970_v9, 8  ;;  %1440 = vmatpush3.msra.mxu0 %v1095_v32 }
  0x8c   :  { %v939_v56 = vadd.f32 %v1329_v55, %v923_v46  ;;  %1441 = vmatprep.subr.mxu0 %v1555_v1 }
  0x8d   :  { %1442 = vmatpush3.msra.mxu0 %v1094_v33 }
  0x8e   :  { %v955_v58 = vadd.f32 %v1333_v16, %v939_v56  ;;  %1443 = vmatprep.subr.mxu0 %v1555_v1 }
  0x8f   :  { %1444 = vmatpush3.msra.mxu0 %v1093_v34 }
  0x90   :  { %v971_v59 = vadd.f32 %v1337_v57, %v955_v58  ;;  %1445 = vmatprep.subr.mxu0 %v1555_v1 }
  0x91   :  { %1446 = vmatpush3.msra.mxu0 %v1092_v35 }
  0x92   :  { %979 = vxpose.xlu1.b32.end [4/4] (short) (narrow) %v971_v59, 8  ;;  %1447 = vmatprep.subr.mxu0 %v1555_v1 }
  0x93   :  { %1448 = vmatpush3.msra.mxu0 %v1091_v8 }
  0x94   :  { %1449 = vmatprep.subr.mxu0 %v1555_v1 }
  0x95   :  { %1450 = vmatpush3.msra.mxu0 %v1090_v36 }
  0x96   :  { %1451 = vmatprep.subr.mxu0 %v1555_v1 }
  0x97   :  { %1452 = vmatpush3.msra.mxu0 %v1089_v37 }
  0xc7   :  { %v399_v60 = vpop.trf.xlu0 }
  0xc8   :  { %1386 = vmatmul.mubr.msk.f32.vlgmr.msra.gmra.mxu1 %vm415_vm9, %v399_v60 }
  0xc9   :  { %1389 = vmatpush3.msra.mxu1 %v244_v17  ;;  %1396 = vmatprep.mubr.msk.f32.mxu1 %vm1556_vm0, %v1555_v1 }
  0xca   :  { %1390 = vmatprep.subr.mxu1 %v1555_v1 }
  0xcb   :  { %1391 = vmatpush3.msra.mxu1 %v243_v61 }
  0xcc   :  { %1392 = vmatprep.subr.mxu1 %v1555_v1 }
  0xcd   :  { %1393 = vmatpush3.msra.mxu1 %v242_v18 }
  0xce   :  { %1394 = vmatprep.subr.mxu1 %v1555_v1 }
  0xcf   :  { %1395 = vmatpush3.msra.mxu1 %v241_v62 }
  0xd0   :  { %1399 = vmatprep.subr.mxu1 %v1555_v1 }
  0xd8   :  { %v505_v63 = vpop.trf.xlu1 }
  0xd9   :  { %1397 = vmatmul.mubr.msk.f32.vlgmr.msra.gmra.mxu1 %vm415_vm9, %v505_v63 }
  0xda   :  { %1400 = vmatpush3.msra.mxu1 %v731_v23  ;;  %1407 = vmatprep.mubr.msk.f32.mxu1 %vm1556_vm0, %v1555_v1 }
  0xdb   :  { %1401 = vmatprep.subr.mxu1 %v1555_v1 }
  0xdc   :  { %1402 = vmatpush3.msra.mxu1 %v730_v0 }
  0xdd   :  { %1403 = vmatprep.subr.mxu1 %v1555_v1 }
  0xde   :  { %1404 = vmatpush3.msra.mxu1 %v729_v3 }
  0xdf   :  { %1405 = vmatprep.subr.mxu1 %v1555_v1 }
  0xe0   :  { %1406 = vmatpush3.msra.mxu1 %v728_v7 }
  0xe1   :  { %1410 = vmatprep.subr.mxu1 %v1555_v1 }
  0xf5   :  { %v748_v20 = vpop.trf.xlu0 }
  0xf6   :  { %1408 = vmatmul.mubr.msk.f32.vlgmr.msra.gmra.mxu1 %vm415_vm9, %v748_v20 }
  0xf7   :  { %1411 = vmatpush3.msra.mxu1 %v975_v19  ;;  %1418 = vmatprep.mubr.msk.f32.mxu1 %vm1556_vm0, %v1555_v1 }
  0xf8   :  { %1412 = vmatprep.subr.mxu1 %v1555_v1 }
  0xf9   :  { %1413 = vmatpush3.msra.mxu1 %v974_v21 }
  0xfa   :  { %1414 = vmatprep.subr.mxu1 %v1555_v1 }
  0xfb   :  { %1415 = vmatpush3.msra.mxu1 %v973_v22 }
  0xfc   :  { %1416 = vmatprep.subr.mxu1 %v1555_v1 }
  0xfd   :  { %1417 = vmatpush3.msra.mxu1 %v972_v25 }
 0x102   :  { %v992_v26 = vpop.trf.xlu1 }
 0x103   :  { %1419 = vmatmul.mubr.msk.f32.vlgmr.msra.gmra.mxu1 %vm415_vm9, %v992_v26 }
 0x188   :  { %v485_v38 = vpop.f32.mrf.mxu1 }
 0x18a   :  { %v1387_v39 = vpop.f32.mrf.mxu1 }
 0x199   :  { %v590_v10 = vpop.f32.mrf.mxu1 }
 0x19a   :  { %v591_v42 = vadd.f32 %v590_v10, %v485_v38 }
 0x19b   :  { %v1398_v40 = vpop.f32.mrf.mxu1 }
 0x1b6   :  { %v833_v41 = vpop.f32.mrf.mxu1 }
 0x1b7   :  { %v837_v43 = vadd.f32 %v833_v41, %v591_v42 }
 0x1b8   :  { %v1409_v4 = vpop.f32.mrf.mxu1 }
 0x1c3   :  { %v1077_v44 = vpop.f32.mrf.mxu1 }
 0x1c4   :  { %v1081_v24 = vadd.f32 %v1077_v44, %v837_v43 }
 0x1c5   :  { %v1420_v45 = vpop.f32.mrf.mxu1 }
 0x1c6   :  { %1454 = vmatmul.mubr.f32.vlgmr.msra.gmra.mxu0 %v1081_v24 }
 0x286   :  { %v1178_v1 = vpop.f32.mrf.mxu0 }
 0x287   :  { %v1179_v6 = vadd.f32 %v1339_v47, %v1178_v1 }
 0x288   :  { %v1455_v48 = vpop.f32.mrf.mxu0 }
 0x289   :  { %1182 = vst [vmem:[#allocation9] sm:$0xff] %v1179_v6 }
 0x28a   :  { %1535 = shalt.err (!%p1532_p5)
}
 0x28b   :  { %1192 = dma.vmem_to_hbm [thread:$0]  %s1190_s6, 128, %s2114_s4, [#allocation5]  }
 0x28c   :  { %1548 = dma.done.wait [#allocation5], 128  }
 0x28d   :  { %1549 = vsyncadd [#allocation5], 4294967168 }
 0x28e   :  { %1196 = vsyncpa [#allocation4], 1 }
 0x28f   :  { %1197 = vsyncpa [#allocation7], 1 }
 0x290   :  { %1198 = vsyncpa [#allocation5], 1 }

</bundles_post_ra>
